<compile_context>
chip_gen: v5e
topology: v5e:2x2
jax: 0.10.0
libtpu: 0.0.40
codegen_flags: <defaults>
</compile_context>

<pallas_src>
import functools

import jax
import jax.numpy as jnp
from jax.experimental import pallas as pl
from jax.experimental.pallas import tpu as pltpu


# ----------------------------------------------------------------------------
# exact (erf-based) GELU, built only from mul/add/exp + EUP reciprocal
# ----------------------------------------------------------------------------
def _erf(x):
    # Abramowitz & Stegun 7.1.26, max abs error ~1.5e-7
    p = 0.3275911
    a1, a2, a3, a4, a5 = (0.254829592, -0.284496736, 1.421413741,
                          -1.453152027, 1.061405429)
    ax = jnp.abs(x)
    t = pl.reciprocal(1.0 + p * ax, approx=True)          # EUP slot
    poly = ((((a5 * t + a4) * t + a3) * t + a2) * t + a1) * t
    y = 1.0 - poly * jnp.exp(-(ax * ax))
    return jnp.where(x >= 0, y, -y)


def _gelu_exact(x):
    return 0.5 * x * (1.0 + _erf(x * 0.7071067811865476))


# ----------------------------------------------------------------------------
# fused transformer kernel: one grid step == (batch block, layer)
# ----------------------------------------------------------------------------
def _fused_layers_kernel(x_ref, maskadd_ref,
                         wqkv_ref, wo_ref,
                         g1_ref, b1_ref,
                         w1_ref, bias1_ref, w2_ref, bias2_ref,
                         g2_ref, b2_ref,
                         out_ref,
                         act_ref,
                         *, heads: int):
    layer = pl.program_id(1)
    bt, n, dim = act_ref.shape
    hd = dim // heads

    # load the input activation into the resident VMEM scratch at layer 0
    @pl.when(layer == 0)
    def _():
        act_ref[...] = x_ref[...].astype(jnp.float32)

    x = act_ref[...]                                       # (bt, n, dim) f32
    xb = x.reshape(bt * n, dim).astype(jnp.bfloat16)

    # --- fused QKV projection: one full-lane-width matmul --------------------
    # 1/sqrt(hd) is already folded into the Wq columns of wqkv.
    qkv = jnp.dot(xb, wqkv_ref[...], preferred_element_type=jnp.float32)
    q = qkv[:, 0 * dim:1 * dim].reshape(bt, n, dim)
    k = qkv[:, 1 * dim:2 * dim].reshape(bt, n, dim)
    v = qkv[:, 2 * dim:3 * dim].reshape(bt, n, dim)

    mask_add = maskadd_ref[...]                            # (bt, 1, n) 0 / -1e6

    # --- per-head attention (static unroll); deferred softmax normalization --
    o_heads = []
    for h in range(heads):
        sl = slice(h * hd, (h + 1) * hd)
        qh = q[:, :, sl].astype(jnp.bfloat16)              # (bt, n, hd)
        kh = k[:, :, sl].astype(jnp.bfloat16)
        vh = v[:, :, sl].astype(jnp.bfloat16)

        s = jnp.einsum("bqd,bkd->bqk", qh, kh,
                       preferred_element_type=jnp.float32)  # (bt, n, n)
        s = s + mask_add
        s_max = jnp.max(s, axis=-1, keepdims=True)
        p = jnp.exp(s - s_max)                              # unnormalized
        inv_denom = pl.reciprocal(jnp.sum(p, axis=-1, keepdims=True),
                                  approx=True)              # (bt, n, 1)
        oh = jnp.einsum("bqk,bkd->bqd", p.astype(jnp.bfloat16), vh,
                        preferred_element_type=jnp.float32)  # (bt, n, hd)
        o_heads.append(oh * inv_denom)                      # normalize output

    # concat-of-heads, then ONE un-split (dim, dim) output projection
    o = jnp.concatenate(o_heads, axis=-1)                   # (bt, n, dim)
    attn = jnp.dot(o.reshape(bt * n, dim).astype(jnp.bfloat16), wo_ref[...],
                   preferred_element_type=jnp.float32).reshape(bt, n, dim)

    # --- residual + LayerNorm 1 (f32) ----------------------------------------
    y = attn + x
    mu = jnp.mean(y, axis=-1, keepdims=True)
    var = jnp.mean(jnp.square(y - mu), axis=-1, keepdims=True)
    y = (y - mu) * jax.lax.rsqrt(var + 1e-5) * g1_ref[...] + b1_ref[...]

    # --- FeedForward: Linear -> GELU(erf) -> Linear ---------------------------
    # TODO(synk): at production dims, tile the hidden dim (hid) over an inner
    # pipeline and stream the key axis (flash-style) to stay within v7x VMEM.
    y2 = y.reshape(bt * n, dim).astype(jnp.bfloat16)
    h1 = jnp.dot(y2, w1_ref[...],
                 preferred_element_type=jnp.float32) + bias1_ref[...]
    h1 = _gelu_exact(h1)
    ff = (jnp.dot(h1.astype(jnp.bfloat16), w2_ref[...],
                  preferred_element_type=jnp.float32) + bias2_ref[...]
          ).reshape(bt, n, dim)

    # --- residual + LayerNorm 2 (f32) ----------------------------------------
    z = ff + y
    mu2 = jnp.mean(z, axis=-1, keepdims=True)
    var2 = jnp.mean(jnp.square(z - mu2), axis=-1, keepdims=True)
    z = (z - mu2) * jax.lax.rsqrt(var2 + 1e-5) * g2_ref[...] + b2_ref[...]

    act_ref[...] = z                                        # carry to next layer

    @pl.when(layer == pl.num_programs(1) - 1)
    def _():
        out_ref[...] = z.astype(out_ref.dtype)


# ----------------------------------------------------------------------------
# wrapper: one pallas_call for the whole stack of layers
# ----------------------------------------------------------------------------
def transformer_forward(x, mask, params, *, heads, b_tile=None):
    bs, n, dim = x.shape
    depth = params["wq"].shape[0]
    hid = params["w1"].shape[-1]
    hd = dim // heads

    if b_tile is None:
        b_tile = bs            # toy sizes: whole batch in one block
    assert bs % b_tile == 0, "b_tile must divide the batch size"

    # fold 1/sqrt(hd) into Wq and fuse [Wq | Wk | Wv] -> (depth, dim, 3*dim)
    inv_scale = 1.0 / (float(hd) ** 0.5)
    wq_scaled = (params["wq"].astype(jnp.float32) * inv_scale).astype(jnp.bfloat16)
    wqkv = jnp.concatenate([wq_scaled, params["wk"], params["wv"]], axis=-1)
    wo = params["wo"]

    # additive key mask: 0 for valid token, -1e6 for masked (padded) key
    mask_add = jnp.where(mask == 1.0, 0.0, -1.0e6).astype(jnp.float32
                         ).reshape(bs, 1, n)

    def wspec(*shape):
        zeros = (0,) * len(shape)
        return pl.BlockSpec((None,) + tuple(shape), lambda b, l: (l,) + zeros)

    # crude VMEM working-set estimate; only raise the scoped limit when needed
    wset = 2 * 2 * (3 * dim * dim + dim * dim + 2 * dim * hid)     # bf16 weights, dbl-buffered
    aset = 4 * b_tile * n * (8 * dim + 2 * hid + 2 * n)            # f32 activations (rough)
    compiler_kwargs = dict(dimension_semantics=("parallel", "arbitrary"))
    if (wset + aset) > (12 << 20):
        compiler_kwargs["vmem_limit_bytes"] = min(int(1.5 * (wset + aset)),
                                                  64 << 20)

    kernel = functools.partial(_fused_layers_kernel, heads=heads)
    return pl.pallas_call(
        kernel,
        out_shape=jax.ShapeDtypeStruct((bs, n, dim), x.dtype),
        grid=(bs // b_tile, depth),
        in_specs=[
            pl.BlockSpec((b_tile, n, dim), lambda b, l: (b, 0, 0)),   # x
            pl.BlockSpec((b_tile, 1, n), lambda b, l: (b, 0, 0)),     # mask_add
            wspec(dim, 3 * dim),                                      # wqkv
            wspec(dim, dim),                                          # wo
            wspec(1, dim), wspec(1, dim),                             # ln1 g, b
            wspec(dim, hid), wspec(1, hid),                           # ff w1, b1
            wspec(hid, dim), wspec(1, dim),                           # ff w2, b2
            wspec(1, dim), wspec(1, dim),                             # ln2 g, b
        ],
        out_specs=pl.BlockSpec((b_tile, n, dim), lambda b, l: (b, 0, 0)),
        scratch_shapes=[pltpu.VMEM((b_tile, n, dim), jnp.float32)],
        compiler_params=pltpu.CompilerParams(**compiler_kwargs),
    )(x, mask_add,
      wqkv, wo,
      params["g1"], params["b1"],
      params["w1"], params["bias1"], params["w2"], params["bias2"],
      params["g2"], params["b2"])


# ----------------------------------------------------------------------------
# parameters (depth-stacked; matmul weights stored bf16, LN/bias f32)
# ----------------------------------------------------------------------------
def init_params(key, dim, depth, heads, ff_hidden_dim):
    ks = jax.random.split(key, 6)
    scale = 0.02

    def w(k, shape):
        return (scale * jax.random.normal(k, (depth,) + shape, jnp.float32)
                ).astype(jnp.bfloat16)

    return dict(
        wq=w(ks[0], (dim, dim)), wk=w(ks[1], (dim, dim)),
        wv=w(ks[2], (dim, dim)), wo=w(ks[3], (dim, dim)),
        w1=w(ks[4], (dim, ff_hidden_dim)), w2=w(ks[5], (ff_hidden_dim, dim)),
        bias1=jnp.zeros((depth, 1, ff_hidden_dim), jnp.float32),
        bias2=jnp.zeros((depth, 1, dim), jnp.float32),
        g1=jnp.ones((depth, 1, dim), jnp.float32),
        b1=jnp.zeros((depth, 1, dim), jnp.float32),
        g2=jnp.ones((depth, 1, dim), jnp.float32),
        b2=jnp.zeros((depth, 1, dim), jnp.float32),
    )


# ----------------------------------------------------------------------------
# pure-JAX f32 reference (loose numerical sanity check)
# ----------------------------------------------------------------------------
def _ln(x, g, b, eps=1e-5):
    mu = jnp.mean(x, -1, keepdims=True)
    var = jnp.mean((x - mu) ** 2, -1, keepdims=True)
    return (x - mu) * jax.lax.rsqrt(var + eps) * g + b


def _reference_forward(x, mask, params, heads):
    bs, n, dim = x.shape
    depth = params["wq"].shape[0]
    hd = dim // heads
    key_valid = (mask == 1.0)[:, None, None, :]            # (bs,1,1,n)
    out = x
    for l in range(depth):
        wq = params["wq"][l].astype(jnp.float32)
        wk = params["wk"][l].astype(jnp.float32)
        wv = params["wv"][l].astype(jnp.float32)
        wo = params["wo"][l].astype(jnp.float32)
        q = (out @ wq).reshape(bs, n, heads, hd).transpose(0, 2, 1, 3)
        k = (out @ wk).reshape(bs, n, heads, hd).transpose(0, 2, 1, 3)
        v = (out @ wv).reshape(bs, n, heads, hd).transpose(0, 2, 1, 3)
        s = jnp.einsum("bhqd,bhkd->bhqk", q, k) / (hd ** 0.5)
        s = jnp.where(key_valid, s, -1000000.0)
        p = jax.nn.softmax(s, axis=-1)
        o = jnp.einsum("bhqk,bhkd->bhqd", p, v).transpose(0, 2, 1, 3).reshape(bs, n, dim)
        y = _ln(o @ wo + out, params["g1"][l, 0], params["b1"][l, 0])
        h1 = jax.nn.gelu(y @ params["w1"][l].astype(jnp.float32)
                         + params["bias1"][l, 0], approximate=False)
        ff = h1 @ params["w2"][l].astype(jnp.float32) + params["bias2"][l, 0]
        out = _ln(ff + y, params["g2"][l, 0], params["b2"][l, 0])
    return out


if __name__ == "__main__":
    bs, n, dim = 2, 8, 32
    heads, ff_hidden_dim, depth = 4, 64, 2

    key = jax.random.PRNGKey(0)
    kx, kp = jax.random.split(key)

    x = jax.random.normal(kx, (bs, n, dim), jnp.float32)
    # mask: 1 = valid token, 0 = masked (padded) key position
    lengths = jnp.array([n, n - 3], dtype=jnp.int32)
    mask = (jnp.arange(n)[None, :] < lengths[:, None]).astype(jnp.float32)

    params = init_params(kp, dim, depth, heads, ff_hidden_dim)

    fwd = jax.jit(functools.partial(transformer_forward, heads=heads))
    out = jax.block_until_ready(fwd(x, mask, params))

    assert out.shape == (bs, n, dim) and out.dtype == jnp.float32
    assert bool(jnp.all(jnp.isfinite(out)))

    # loose check vs. f32 reference (kernel uses bf16 MXU inputs + approx rcp)
    ref = _reference_forward(x, mask, params, heads)
    max_err = float(jnp.max(jnp.abs(out - ref)))
    assert max_err < 0.2, f"max abs error vs reference too large: {max_err}"

    print("KERNEL_OK")
</pallas_src>

<mosaic_0001>
module attributes {stable_mosaic.version = 11 : i64} {
  func.func @_fused_layers_kernel(%arg0: i32, %arg1: i32, %arg2: memref<2x8x32xf32, #tpu.memory_space<vmem>>, %arg3: memref<2x1x8xf32, #tpu.memory_space<vmem>>, %arg4: memref<1x32x96xbf16, #tpu.memory_space<vmem>>, %arg5: memref<1x32x32xbf16, #tpu.memory_space<vmem>>, %arg6: memref<1x1x32xf32, #tpu.memory_space<vmem>>, %arg7: memref<1x1x32xf32, #tpu.memory_space<vmem>>, %arg8: memref<1x32x64xbf16, #tpu.memory_space<vmem>>, %arg9: memref<1x1x64xf32, #tpu.memory_space<vmem>>, %arg10: memref<1x64x32xbf16, #tpu.memory_space<vmem>>, %arg11: memref<1x1x32xf32, #tpu.memory_space<vmem>>, %arg12: memref<1x1x32xf32, #tpu.memory_space<vmem>>, %arg13: memref<1x1x32xf32, #tpu.memory_space<vmem>>, %arg14: memref<2x8x32xf32, #tpu.memory_space<vmem>>, %arg15: memref<2x8x32xf32, #tpu.memory_space<vmem>>) attributes {dimension_semantics = [#tpu.dimension_semantics<parallel>, #tpu.dimension_semantics<arbitrary>], iteration_bounds = array<i64: 1, 2>, scalar_prefetch = 0 : i64, scratch_operands = 1 : i64, tpu.core_type = #tpu.core_type<tc>, window_params = [{transform_indices = @transform_0, window_bounds = array<i64: 2, 8, 32>}, {transform_indices = @transform_1, window_bounds = array<i64: 2, 1, 8>}, {transform_indices = @transform_2, window_bounds = array<i64: 1, 32, 96>}, {transform_indices = @transform_3, window_bounds = array<i64: 1, 32, 32>}, {transform_indices = @transform_4, window_bounds = array<i64: 1, 1, 32>}, {transform_indices = @transform_5, window_bounds = array<i64: 1, 1, 32>}, {transform_indices = @transform_6, window_bounds = array<i64: 1, 32, 64>}, {transform_indices = @transform_7, window_bounds = array<i64: 1, 1, 64>}, {transform_indices = @transform_8, window_bounds = array<i64: 1, 64, 32>}, {transform_indices = @transform_9, window_bounds = array<i64: 1, 1, 32>}, {transform_indices = @transform_10, window_bounds = array<i64: 1, 1, 32>}, {transform_indices = @transform_11, window_bounds = array<i64: 1, 1, 32>}, {transform_indices = @transform_12, window_bounds = array<i64: 2, 8, 32>}]} {
    %c0_i32 = arith.constant 0 : i32
    %0 = arith.cmpi eq, %arg1, %c0_i32 : i32
    %1 = arith.extui %0 : i1 to i32
    %c0_i32_0 = arith.constant 0 : i32
    %2 = arith.cmpi ne, %1, %c0_i32_0 : i32
    scf.if %2 {
      %c0_83 = arith.constant 0 : index
      %c0_84 = arith.constant 0 : index
      %c0_85 = arith.constant 0 : index
      %226 = vector.load %arg2[%c0_83, %c0_84, %c0_85] : memref<2x8x32xf32, #tpu.memory_space<vmem>>, vector<2x8x32xf32>
      %c0_86 = arith.constant 0 : index
      %c0_87 = arith.constant 0 : index
      %c0_88 = arith.constant 0 : index
      %227 = vector.load %arg15[%c0_86, %c0_87, %c0_88] : memref<2x8x32xf32, #tpu.memory_space<vmem>>, vector<2x8x32xf32>
      tpu.vector_store %arg15[%c0_86, %c0_87, %c0_88], %226 {strides = array<i32>} : memref<2x8x32xf32, #tpu.memory_space<vmem>>, vector<2x8x32xf32>,
    } else {
    }
    %c0 = arith.constant 0 : index
    %c0_1 = arith.constant 0 : index
    %c0_2 = arith.constant 0 : index
    %3 = vector.load %arg15[%c0, %c0_1, %c0_2] : memref<2x8x32xf32, #tpu.memory_space<vmem>>, vector<2x8x32xf32>
    %4 = vector.shape_cast %3 : vector<2x8x32xf32> to vector<16x32xf32>
    %5 = arith.truncf %4 : vector<16x32xf32> to vector<16x32xbf16>
    %c0_3 = arith.constant 0 : index
    %c0_4 = arith.constant 0 : index
    %c0_5 = arith.constant 0 : index
    %6 = vector.load %arg4[%c0_3, %c0_4, %c0_5] : memref<1x32x96xbf16, #tpu.memory_space<vmem>>, vector<1x32x96xbf16>
    %7 = vector.shape_cast %6 : vector<1x32x96xbf16> to vector<32x96xbf16>
    %cst = arith.constant dense<0.000000e+00> : vector<16x96xf32>
    %8 = tpu.matmul %5, %7, %cst {dimension_numbers = #tpu.dot_dimension_numbers<[1], [0], [0], [1], [0, 0, 1, 1], [], []>} : vector<16x32xbf16>, vector<32x96xbf16>, vector<16x96xf32> -> vector<16x96xf32>
    %9 = vector.extract_strided_slice %8 {offsets = [0, 0], sizes = [16, 32], strides = [1, 1]} : vector<16x96xf32> to vector<16x32xf32>
    %10 = vector.shape_cast %9 : vector<16x32xf32> to vector<2x8x32xf32>
    %11 = vector.extract_strided_slice %8 {offsets = [0, 32], sizes = [16, 32], strides = [1, 1]} : vector<16x96xf32> to vector<16x32xf32>
    %12 = vector.shape_cast %11 : vector<16x32xf32> to vector<2x8x32xf32>
    %13 = vector.extract_strided_slice %8 {offsets = [0, 64], sizes = [16, 32], strides = [1, 1]} : vector<16x96xf32> to vector<16x32xf32>
    %14 = vector.shape_cast %13 : vector<16x32xf32> to vector<2x8x32xf32>
    %c0_6 = arith.constant 0 : index
    %c0_7 = arith.constant 0 : index
    %c0_8 = arith.constant 0 : index
    %15 = vector.load %arg3[%c0_6, %c0_7, %c0_8] : memref<2x1x8xf32, #tpu.memory_space<vmem>>, vector<2x1x8xf32>
    %16 = vector.extract_strided_slice %10 {offsets = [0, 0, 0], sizes = [2, 8, 8], strides = [1, 1, 1]} : vector<2x8x32xf32> to vector<2x8x8xf32>
    %17 = arith.truncf %16 : vector<2x8x8xf32> to vector<2x8x8xbf16>
    %18 = vector.extract_strided_slice %12 {offsets = [0, 0, 0], sizes = [2, 8, 8], strides = [1, 1, 1]} : vector<2x8x32xf32> to vector<2x8x8xf32>
    %19 = arith.truncf %18 : vector<2x8x8xf32> to vector<2x8x8xbf16>
    %20 = vector.extract_strided_slice %14 {offsets = [0, 0, 0], sizes = [2, 8, 8], strides = [1, 1, 1]} : vector<2x8x32xf32> to vector<2x8x8xf32>
    %21 = arith.truncf %20 : vector<2x8x8xf32> to vector<2x8x8xbf16>
    "tpu.trace_start"() <{level = 10 : i32, message = "bqd,bkd->bqk"}> : () -> ()
    %cst_9 = arith.constant dense<0.000000e+00> : vector<2x8x8xf32>
    %22 = tpu.matmul %17, %19, %cst_9 {dimension_numbers = #tpu.dot_dimension_numbers<[2], [2], [1], [1], [0, 0, 0, 1, 1, 1], [0], [0]>} : vector<2x8x8xbf16>, vector<2x8x8xbf16>, vector<2x8x8xf32> -> vector<2x8x8xf32>
    "tpu.trace_stop"() : () -> ()
    %23 = vector.broadcast %15 : vector<2x1x8xf32> to vector<2x8x8xf32>
    %24 = arith.addf %22, %23 : vector<2x8x8xf32>
    %cst_10 = arith.constant dense<0xFF800000> : vector<2x8xf32>
    %25 = vector.multi_reduction <maximumf>, %24, %cst_10 [2] : vector<2x8x8xf32> to vector<2x8xf32>
    %26 = vector.shape_cast %25 : vector<2x8xf32> to vector<2x8x1xf32>
    %27 = vector.broadcast %26 : vector<2x8x1xf32> to vector<2x8x8xf32>
    %28 = arith.subf %24, %27 : vector<2x8x8xf32>
    %29 = math.exp %28 : vector<2x8x8xf32>
    %cst_11 = arith.constant dense<0.000000e+00> : vector<2x8xf32>
    %30 = vector.multi_reduction <add>, %29, %cst_11 [2] : vector<2x8x8xf32> to vector<2x8xf32>
    %31 = vector.shape_cast %30 : vector<2x8xf32> to vector<2x8x1xf32>
    %32 = tpu.reciprocal %31 {approx = true} : vector<2x8x1xf32> -> vector<2x8x1xf32>
    %33 = arith.truncf %29 : vector<2x8x8xf32> to vector<2x8x8xbf16>
    "tpu.trace_start"() <{level = 10 : i32, message = "bqk,bkd->bqd"}> : () -> ()
    %cst_12 = arith.constant dense<0.000000e+00> : vector<2x8x8xf32>
    %34 = tpu.matmul %33, %21, %cst_12 {dimension_numbers = #tpu.dot_dimension_numbers<[2], [1], [1], [2], [0, 0, 0, 1, 1, 2], [0], [0]>} : vector<2x8x8xbf16>, vector<2x8x8xbf16>, vector<2x8x8xf32> -> vector<2x8x8xf32>
    "tpu.trace_stop"() : () -> ()
    %35 = vector.broadcast %32 : vector<2x8x1xf32> to vector<2x8x8xf32>
    %36 = arith.mulf %34, %35 : vector<2x8x8xf32>
    %37 = vector.extract_strided_slice %10 {offsets = [0, 0, 8], sizes = [2, 8, 8], strides = [1, 1, 1]} : vector<2x8x32xf32> to vector<2x8x8xf32>
    %38 = arith.truncf %37 : vector<2x8x8xf32> to vector<2x8x8xbf16>
    %39 = vector.extract_strided_slice %12 {offsets = [0, 0, 8], sizes = [2, 8, 8], strides = [1, 1, 1]} : vector<2x8x32xf32> to vector<2x8x8xf32>
    %40 = arith.truncf %39 : vector<2x8x8xf32> to vector<2x8x8xbf16>
    %41 = vector.extract_strided_slice %14 {offsets = [0, 0, 8], sizes = [2, 8, 8], strides = [1, 1, 1]} : vector<2x8x32xf32> to vector<2x8x8xf32>
    %42 = arith.truncf %41 : vector<2x8x8xf32> to vector<2x8x8xbf16>
    "tpu.trace_start"() <{level = 10 : i32, message = "bqd,bkd->bqk"}> : () -> ()
    %cst_13 = arith.constant dense<0.000000e+00> : vector<2x8x8xf32>
    %43 = tpu.matmul %38, %40, %cst_13 {dimension_numbers = #tpu.dot_dimension_numbers<[2], [2], [1], [1], [0, 0, 0, 1, 1, 1], [0], [0]>} : vector<2x8x8xbf16>, vector<2x8x8xbf16>, vector<2x8x8xf32> -> vector<2x8x8xf32>
    "tpu.trace_stop"() : () -> ()
    %44 = vector.broadcast %15 : vector<2x1x8xf32> to vector<2x8x8xf32>
    %45 = arith.addf %43, %44 : vector<2x8x8xf32>
    %cst_14 = arith.constant dense<0xFF800000> : vector<2x8xf32>
    %46 = vector.multi_reduction <maximumf>, %45, %cst_14 [2] : vector<2x8x8xf32> to vector<2x8xf32>
    %47 = vector.shape_cast %46 : vector<2x8xf32> to vector<2x8x1xf32>
    %48 = vector.broadcast %47 : vector<2x8x1xf32> to vector<2x8x8xf32>
    %49 = arith.subf %45, %48 : vector<2x8x8xf32>
    %50 = math.exp %49 : vector<2x8x8xf32>
    %cst_15 = arith.constant dense<0.000000e+00> : vector<2x8xf32>
    %51 = vector.multi_reduction <add>, %50, %cst_15 [2] : vector<2x8x8xf32> to vector<2x8xf32>
    %52 = vector.shape_cast %51 : vector<2x8xf32> to vector<2x8x1xf32>
    %53 = tpu.reciprocal %52 {approx = true} : vector<2x8x1xf32> -> vector<2x8x1xf32>
    %54 = arith.truncf %50 : vector<2x8x8xf32> to vector<2x8x8xbf16>
    "tpu.trace_start"() <{level = 10 : i32, message = "bqk,bkd->bqd"}> : () -> ()
    %cst_16 = arith.constant dense<0.000000e+00> : vector<2x8x8xf32>
    %55 = tpu.matmul %54, %42, %cst_16 {dimension_numbers = #tpu.dot_dimension_numbers<[2], [1], [1], [2], [0, 0, 0, 1, 1, 2], [0], [0]>} : vector<2x8x8xbf16>, vector<2x8x8xbf16>, vector<2x8x8xf32> -> vector<2x8x8xf32>
    "tpu.trace_stop"() : () -> ()
    %56 = vector.broadcast %53 : vector<2x8x1xf32> to vector<2x8x8xf32>
    %57 = arith.mulf %55, %56 : vector<2x8x8xf32>
    %58 = vector.extract_strided_slice %10 {offsets = [0, 0, 16], sizes = [2, 8, 8], strides = [1, 1, 1]} : vector<2x8x32xf32> to vector<2x8x8xf32>
    %59 = arith.truncf %58 : vector<2x8x8xf32> to vector<2x8x8xbf16>
    %60 = vector.extract_strided_slice %12 {offsets = [0, 0, 16], sizes = [2, 8, 8], strides = [1, 1, 1]} : vector<2x8x32xf32> to vector<2x8x8xf32>
    %61 = arith.truncf %60 : vector<2x8x8xf32> to vector<2x8x8xbf16>
    %62 = vector.extract_strided_slice %14 {offsets = [0, 0, 16], sizes = [2, 8, 8], strides = [1, 1, 1]} : vector<2x8x32xf32> to vector<2x8x8xf32>
    %63 = arith.truncf %62 : vector<2x8x8xf32> to vector<2x8x8xbf16>
    "tpu.trace_start"() <{level = 10 : i32, message = "bqd,bkd->bqk"}> : () -> ()
    %cst_17 = arith.constant dense<0.000000e+00> : vector<2x8x8xf32>
    %64 = tpu.matmul %59, %61, %cst_17 {dimension_numbers = #tpu.dot_dimension_numbers<[2], [2], [1], [1], [0, 0, 0, 1, 1, 1], [0], [0]>} : vector<2x8x8xbf16>, vector<2x8x8xbf16>, vector<2x8x8xf32> -> vector<2x8x8xf32>
    "tpu.trace_stop"() : () -> ()
    %65 = vector.broadcast %15 : vector<2x1x8xf32> to vector<2x8x8xf32>
    %66 = arith.addf %64, %65 : vector<2x8x8xf32>
    %cst_18 = arith.constant dense<0xFF800000> : vector<2x8xf32>
    %67 = vector.multi_reduction <maximumf>, %66, %cst_18 [2] : vector<2x8x8xf32> to vector<2x8xf32>
    %68 = vector.shape_cast %67 : vector<2x8xf32> to vector<2x8x1xf32>
    %69 = vector.broadcast %68 : vector<2x8x1xf32> to vector<2x8x8xf32>
    %70 = arith.subf %66, %69 : vector<2x8x8xf32>
    %71 = math.exp %70 : vector<2x8x8xf32>
    %cst_19 = arith.constant dense<0.000000e+00> : vector<2x8xf32>
    %72 = vector.multi_reduction <add>, %71, %cst_19 [2] : vector<2x8x8xf32> to vector<2x8xf32>
    %73 = vector.shape_cast %72 : vector<2x8xf32> to vector<2x8x1xf32>
    %74 = tpu.reciprocal %73 {approx = true} : vector<2x8x1xf32> -> vector<2x8x1xf32>
    %75 = arith.truncf %71 : vector<2x8x8xf32> to vector<2x8x8xbf16>
    "tpu.trace_start"() <{level = 10 : i32, message = "bqk,bkd->bqd"}> : () -> ()
    %cst_20 = arith.constant dense<0.000000e+00> : vector<2x8x8xf32>
    %76 = tpu.matmul %75, %63, %cst_20 {dimension_numbers = #tpu.dot_dimension_numbers<[2], [1], [1], [2], [0, 0, 0, 1, 1, 2], [0], [0]>} : vector<2x8x8xbf16>, vector<2x8x8xbf16>, vector<2x8x8xf32> -> vector<2x8x8xf32>
    "tpu.trace_stop"() : () -> ()
    %77 = vector.broadcast %74 : vector<2x8x1xf32> to vector<2x8x8xf32>
    %78 = arith.mulf %76, %77 : vector<2x8x8xf32>
    %79 = vector.extract_strided_slice %10 {offsets = [0, 0, 24], sizes = [2, 8, 8], strides = [1, 1, 1]} : vector<2x8x32xf32> to vector<2x8x8xf32>
    %80 = arith.truncf %79 : vector<2x8x8xf32> to vector<2x8x8xbf16>
    %81 = vector.extract_strided_slice %12 {offsets = [0, 0, 24], sizes = [2, 8, 8], strides = [1, 1, 1]} : vector<2x8x32xf32> to vector<2x8x8xf32>
    %82 = arith.truncf %81 : vector<2x8x8xf32> to vector<2x8x8xbf16>
    %83 = vector.extract_strided_slice %14 {offsets = [0, 0, 24], sizes = [2, 8, 8], strides = [1, 1, 1]} : vector<2x8x32xf32> to vector<2x8x8xf32>
    %84 = arith.truncf %83 : vector<2x8x8xf32> to vector<2x8x8xbf16>
    "tpu.trace_start"() <{level = 10 : i32, message = "bqd,bkd->bqk"}> : () -> ()
    %cst_21 = arith.constant dense<0.000000e+00> : vector<2x8x8xf32>
    %85 = tpu.matmul %80, %82, %cst_21 {dimension_numbers = #tpu.dot_dimension_numbers<[2], [2], [1], [1], [0, 0, 0, 1, 1, 1], [0], [0]>} : vector<2x8x8xbf16>, vector<2x8x8xbf16>, vector<2x8x8xf32> -> vector<2x8x8xf32>
    "tpu.trace_stop"() : () -> ()
    %86 = vector.broadcast %15 : vector<2x1x8xf32> to vector<2x8x8xf32>
    %87 = arith.addf %85, %86 : vector<2x8x8xf32>
    %cst_22 = arith.constant dense<0xFF800000> : vector<2x8xf32>
    %88 = vector.multi_reduction <maximumf>, %87, %cst_22 [2] : vector<2x8x8xf32> to vector<2x8xf32>
    %89 = vector.shape_cast %88 : vector<2x8xf32> to vector<2x8x1xf32>
    %90 = vector.broadcast %89 : vector<2x8x1xf32> to vector<2x8x8xf32>
    %91 = arith.subf %87, %90 : vector<2x8x8xf32>
    %92 = math.exp %91 : vector<2x8x8xf32>
    %cst_23 = arith.constant dense<0.000000e+00> : vector<2x8xf32>
    %93 = vector.multi_reduction <add>, %92, %cst_23 [2] : vector<2x8x8xf32> to vector<2x8xf32>
    %94 = vector.shape_cast %93 : vector<2x8xf32> to vector<2x8x1xf32>
    %95 = tpu.reciprocal %94 {approx = true} : vector<2x8x1xf32> -> vector<2x8x1xf32>
    %96 = arith.truncf %92 : vector<2x8x8xf32> to vector<2x8x8xbf16>
    "tpu.trace_start"() <{level = 10 : i32, message = "bqk,bkd->bqd"}> : () -> ()
    %cst_24 = arith.constant dense<0.000000e+00> : vector<2x8x8xf32>
    %97 = tpu.matmul %96, %84, %cst_24 {dimension_numbers = #tpu.dot_dimension_numbers<[2], [1], [1], [2], [0, 0, 0, 1, 1, 2], [0], [0]>} : vector<2x8x8xbf16>, vector<2x8x8xbf16>, vector<2x8x8xf32> -> vector<2x8x8xf32>
    "tpu.trace_stop"() : () -> ()
    %98 = vector.broadcast %95 : vector<2x8x1xf32> to vector<2x8x8xf32>
    %99 = arith.mulf %97, %98 : vector<2x8x8xf32>
    %100 = tpu.concatenate %36, %57, %78, %99 in 2 : vector<2x8x8xf32>, vector<2x8x8xf32>, vector<2x8x8xf32>, vector<2x8x8xf32> -> vector<2x8x32xf32>
    %101 = vector.shape_cast %100 : vector<2x8x32xf32> to vector<16x32xf32>
    %102 = arith.truncf %101 : vector<16x32xf32> to vector<16x32xbf16>
    %c0_25 = arith.constant 0 : index
    %c0_26 = arith.constant 0 : index
    %c0_27 = arith.constant 0 : index
    %103 = vector.load %arg5[%c0_25, %c0_26, %c0_27] : memref<1x32x32xbf16, #tpu.memory_space<vmem>>, vector<1x32x32xbf16>
    %104 = vector.shape_cast %103 : vector<1x32x32xbf16> to vector<32x32xbf16>
    %cst_28 = arith.constant dense<0.000000e+00> : vector<16x32xf32>
    %105 = tpu.matmul %102, %104, %cst_28 {dimension_numbers = #tpu.dot_dimension_numbers<[1], [0], [0], [1], [0, 0, 1, 1], [], []>} : vector<16x32xbf16>, vector<32x32xbf16>, vector<16x32xf32> -> vector<16x32xf32>
    %106 = vector.shape_cast %105 : vector<16x32xf32> to vector<2x8x32xf32>
    %107 = arith.addf %106, %3 : vector<2x8x32xf32>
    %cst_29 = arith.constant dense<0.000000e+00> : vector<2x8xf32>
    %108 = vector.multi_reduction <add>, %107, %cst_29 [2] : vector<2x8x32xf32> to vector<2x8xf32>
    %109 = vector.shape_cast %108 : vector<2x8xf32> to vector<2x8x1xf32>
    %cst_30 = arith.constant 3.200000e+01 : f32
    %110 = vector.broadcast %cst_30 : f32 to vector<2x8x1xf32>
    %111 = arith.divf %109, %110 : vector<2x8x1xf32>
    %112 = vector.broadcast %111 : vector<2x8x1xf32> to vector<2x8x32xf32>
    %113 = arith.subf %107, %112 : vector<2x8x32xf32>
    %114 = arith.mulf %113, %113 : vector<2x8x32xf32>
    %cst_31 = arith.constant dense<0.000000e+00> : vector<2x8xf32>
    %115 = vector.multi_reduction <add>, %114, %cst_31 [2] : vector<2x8x32xf32> to vector<2x8xf32>
    %116 = vector.shape_cast %115 : vector<2x8xf32> to vector<2x8x1xf32>
    %cst_32 = arith.constant 3.200000e+01 : f32
    %117 = vector.broadcast %cst_32 : f32 to vector<2x8x1xf32>
    %118 = arith.divf %116, %117 : vector<2x8x1xf32>
    %119 = vector.broadcast %111 : vector<2x8x1xf32> to vector<2x8x32xf32>
    %120 = arith.subf %107, %119 : vector<2x8x32xf32>
    %cst_33 = arith.constant 9.99999974E-6 : f32
    %121 = vector.broadcast %cst_33 : f32 to vector<2x8x1xf32>
    %122 = arith.addf %118, %121 : vector<2x8x1xf32>
    %123 = math.rsqrt %122 : vector<2x8x1xf32>
    %124 = vector.broadcast %123 : vector<2x8x1xf32> to vector<2x8x32xf32>
    %125 = arith.mulf %120, %124 : vector<2x8x32xf32>
    %c0_34 = arith.constant 0 : index
    %c0_35 = arith.constant 0 : index
    %c0_36 = arith.constant 0 : index
    %126 = vector.load %arg6[%c0_34, %c0_35, %c0_36] : memref<1x1x32xf32, #tpu.memory_space<vmem>>, vector<1x1x32xf32>
    %127 = vector.shape_cast %126 : vector<1x1x32xf32> to vector<1x32xf32>
    %128 = vector.shape_cast %127 : vector<1x32xf32> to vector<1x1x32xf32>
    %129 = vector.broadcast %128 : vector<1x1x32xf32> to vector<2x8x32xf32>
    %130 = arith.mulf %125, %129 : vector<2x8x32xf32>
    %c0_37 = arith.constant 0 : index
    %c0_38 = arith.constant 0 : index
    %c0_39 = arith.constant 0 : index
    %131 = vector.load %arg7[%c0_37, %c0_38, %c0_39] : memref<1x1x32xf32, #tpu.memory_space<vmem>>, vector<1x1x32xf32>
    %132 = vector.shape_cast %131 : vector<1x1x32xf32> to vector<1x32xf32>
    %133 = vector.shape_cast %132 : vector<1x32xf32> to vector<1x1x32xf32>
    %134 = vector.broadcast %133 : vector<1x1x32xf32> to vector<2x8x32xf32>
    %135 = arith.addf %130, %134 : vector<2x8x32xf32>
    %136 = vector.shape_cast %135 : vector<2x8x32xf32> to vector<16x32xf32>
    %137 = arith.truncf %136 : vector<16x32xf32> to vector<16x32xbf16>
    %c0_40 = arith.constant 0 : index
    %c0_41 = arith.constant 0 : index
    %c0_42 = arith.constant 0 : index
    %138 = vector.load %arg8[%c0_40, %c0_41, %c0_42] : memref<1x32x64xbf16, #tpu.memory_space<vmem>>, vector<1x32x64xbf16>
    %139 = vector.shape_cast %138 : vector<1x32x64xbf16> to vector<32x64xbf16>
    %cst_43 = arith.constant dense<0.000000e+00> : vector<16x64xf32>
    %140 = tpu.matmul %137, %139, %cst_43 {dimension_numbers = #tpu.dot_dimension_numbers<[1], [0], [0], [1], [0, 0, 1, 1], [], []>} : vector<16x32xbf16>, vector<32x64xbf16>, vector<16x64xf32> -> vector<16x64xf32>
    %c0_44 = arith.constant 0 : index
    %c0_45 = arith.constant 0 : index
    %c0_46 = arith.constant 0 : index
    %141 = vector.load %arg9[%c0_44, %c0_45, %c0_46] : memref<1x1x64xf32, #tpu.memory_space<vmem>>, vector<1x1x64xf32>
    %142 = vector.shape_cast %141 : vector<1x1x64xf32> to vector<1x64xf32>
    %143 = vector.broadcast %142 : vector<1x64xf32> to vector<16x64xf32>
    %144 = arith.addf %140, %143 : vector<16x64xf32>
    %cst_47 = arith.constant 5.000000e-01 : f32
    %145 = vector.broadcast %cst_47 : f32 to vector<16x64xf32>
    %146 = arith.mulf %145, %144 : vector<16x64xf32>
    %cst_48 = arith.constant 0.707106769 : f32
    %147 = vector.broadcast %cst_48 : f32 to vector<16x64xf32>
    %148 = arith.mulf %144, %147 : vector<16x64xf32>
    %149 = math.absf %148 : vector<16x64xf32>
    %cst_49 = arith.constant 0.327591091 : f32
    %150 = vector.broadcast %cst_49 : f32 to vector<16x64xf32>
    %151 = arith.mulf %150, %149 : vector<16x64xf32>
    %cst_50 = arith.constant 1.000000e+00 : f32
    %152 = vector.broadcast %cst_50 : f32 to vector<16x64xf32>
    %153 = arith.addf %152, %151 : vector<16x64xf32>
    %154 = tpu.reciprocal %153 {approx = true} : vector<16x64xf32> -> vector<16x64xf32>
    %cst_51 = arith.constant 1.06140542 : f32
    %155 = vector.broadcast %cst_51 : f32 to vector<16x64xf32>
    %156 = arith.mulf %155, %154 : vector<16x64xf32>
    %cst_52 = arith.constant -1.45315206 : f32
    %157 = vector.broadcast %cst_52 : f32 to vector<16x64xf32>
    %158 = arith.addf %156, %157 : vector<16x64xf32>
    %159 = arith.mulf %158, %154 : vector<16x64xf32>
    %cst_53 = arith.constant 1.42141378 : f32
    %160 = vector.broadcast %cst_53 : f32 to vector<16x64xf32>
    %161 = arith.addf %159, %160 : vector<16x64xf32>
    %162 = arith.mulf %161, %154 : vector<16x64xf32>
    %cst_54 = arith.constant -0.284496725 : f32
    %163 = vector.broadcast %cst_54 : f32 to vector<16x64xf32>
    %164 = arith.addf %162, %163 : vector<16x64xf32>
    %165 = arith.mulf %164, %154 : vector<16x64xf32>
    %cst_55 = arith.constant 0.254829586 : f32
    %166 = vector.broadcast %cst_55 : f32 to vector<16x64xf32>
    %167 = arith.addf %165, %166 : vector<16x64xf32>
    %168 = arith.mulf %167, %154 : vector<16x64xf32>
    %169 = arith.mulf %149, %149 : vector<16x64xf32>
    %cst_56 = arith.constant 0.000000e+00 : f32
    %170 = vector.broadcast %cst_56 : f32 to vector<16x64xf32>
    %171 = arith.subf %170, %169 : vector<16x64xf32>
    %172 = math.exp %171 : vector<16x64xf32>
    %173 = arith.mulf %168, %172 : vector<16x64xf32>
    %cst_57 = arith.constant 1.000000e+00 : f32
    %174 = vector.broadcast %cst_57 : f32 to vector<16x64xf32>
    %175 = arith.subf %174, %173 : vector<16x64xf32>
    %cst_58 = arith.constant 0.000000e+00 : f32
    %176 = vector.broadcast %cst_58 : f32 to vector<16x64xf32>
    %177 = arith.cmpf oge, %148, %176 : vector<16x64xf32>
    %cst_59 = arith.constant 0.000000e+00 : f32
    %178 = vector.broadcast %cst_59 : f32 to vector<16x64xf32>
    %179 = arith.subf %178, %175 : vector<16x64xf32>
    %180 = arith.select %177, %175, %179 : vector<16x64xi1>, vector<16x64xf32>
    %cst_60 = arith.constant 1.000000e+00 : f32
    %181 = vector.broadcast %cst_60 : f32 to vector<16x64xf32>
    %182 = arith.addf %181, %180 : vector<16x64xf32>
    %183 = arith.mulf %146, %182 : vector<16x64xf32>
    %184 = arith.truncf %183 : vector<16x64xf32> to vector<16x64xbf16>
    %c0_61 = arith.constant 0 : index
    %c0_62 = arith.constant 0 : index
    %c0_63 = arith.constant 0 : index
    %185 = vector.load %arg10[%c0_61, %c0_62, %c0_63] : memref<1x64x32xbf16, #tpu.memory_space<vmem>>, vector<1x64x32xbf16>
    %186 = vector.shape_cast %185 : vector<1x64x32xbf16> to vector<64x32xbf16>
    %cst_64 = arith.constant dense<0.000000e+00> : vector<16x32xf32>
    %187 = tpu.matmul %184, %186, %cst_64 {dimension_numbers = #tpu.dot_dimension_numbers<[1], [0], [0], [1], [0, 0, 1, 1], [], []>} : vector<16x64xbf16>, vector<64x32xbf16>, vector<16x32xf32> -> vector<16x32xf32>
    %c0_65 = arith.constant 0 : index
    %c0_66 = arith.constant 0 : index
    %c0_67 = arith.constant 0 : index
    %188 = vector.load %arg11[%c0_65, %c0_66, %c0_67] : memref<1x1x32xf32, #tpu.memory_space<vmem>>, vector<1x1x32xf32>
    %189 = vector.shape_cast %188 : vector<1x1x32xf32> to vector<1x32xf32>
    %190 = vector.broadcast %189 : vector<1x32xf32> to vector<16x32xf32>
    %191 = arith.addf %187, %190 : vector<16x32xf32>
    %192 = vector.shape_cast %191 : vector<16x32xf32> to vector<2x8x32xf32>
    %193 = arith.addf %192, %135 : vector<2x8x32xf32>
    %cst_68 = arith.constant dense<0.000000e+00> : vector<2x8xf32>
    %194 = vector.multi_reduction <add>, %193, %cst_68 [2] : vector<2x8x32xf32> to vector<2x8xf32>
    %195 = vector.shape_cast %194 : vector<2x8xf32> to vector<2x8x1xf32>
    %cst_69 = arith.constant 3.200000e+01 : f32
    %196 = vector.broadcast %cst_69 : f32 to vector<2x8x1xf32>
    %197 = arith.divf %195, %196 : vector<2x8x1xf32>
    %198 = vector.broadcast %197 : vector<2x8x1xf32> to vector<2x8x32xf32>
    %199 = arith.subf %193, %198 : vector<2x8x32xf32>
    %200 = arith.mulf %199, %199 : vector<2x8x32xf32>
    %cst_70 = arith.constant dense<0.000000e+00> : vector<2x8xf32>
    %201 = vector.multi_reduction <add>, %200, %cst_70 [2] : vector<2x8x32xf32> to vector<2x8xf32>
    %202 = vector.shape_cast %201 : vector<2x8xf32> to vector<2x8x1xf32>
    %cst_71 = arith.constant 3.200000e+01 : f32
    %203 = vector.broadcast %cst_71 : f32 to vector<2x8x1xf32>
    %204 = arith.divf %202, %203 : vector<2x8x1xf32>
    %205 = vector.broadcast %197 : vector<2x8x1xf32> to vector<2x8x32xf32>
    %206 = arith.subf %193, %205 : vector<2x8x32xf32>
    %cst_72 = arith.constant 9.99999974E-6 : f32
    %207 = vector.broadcast %cst_72 : f32 to vector<2x8x1xf32>
    %208 = arith.addf %204, %207 : vector<2x8x1xf32>
    %209 = math.rsqrt %208 : vector<2x8x1xf32>
    %210 = vector.broadcast %209 : vector<2x8x1xf32> to vector<2x8x32xf32>
    %211 = arith.mulf %206, %210 : vector<2x8x32xf32>
    %c0_73 = arith.constant 0 : index
    %c0_74 = arith.constant 0 : index
    %c0_75 = arith.constant 0 : index
    %212 = vector.load %arg12[%c0_73, %c0_74, %c0_75] : memref<1x1x32xf32, #tpu.memory_space<vmem>>, vector<1x1x32xf32>
    %213 = vector.shape_cast %212 : vector<1x1x32xf32> to vector<1x32xf32>
    %214 = vector.shape_cast %213 : vector<1x32xf32> to vector<1x1x32xf32>
    %215 = vector.broadcast %214 : vector<1x1x32xf32> to vector<2x8x32xf32>
    %216 = arith.mulf %211, %215 : vector<2x8x32xf32>
    %c0_76 = arith.constant 0 : index
    %c0_77 = arith.constant 0 : index
    %c0_78 = arith.constant 0 : index
    %217 = vector.load %arg13[%c0_76, %c0_77, %c0_78] : memref<1x1x32xf32, #tpu.memory_space<vmem>>, vector<1x1x32xf32>
    %218 = vector.shape_cast %217 : vector<1x1x32xf32> to vector<1x32xf32>
    %219 = vector.shape_cast %218 : vector<1x32xf32> to vector<1x1x32xf32>
    %220 = vector.broadcast %219 : vector<1x1x32xf32> to vector<2x8x32xf32>
    %221 = arith.addf %216, %220 : vector<2x8x32xf32>
    %c0_79 = arith.constant 0 : index
    %c0_80 = arith.constant 0 : index
    %c0_81 = arith.constant 0 : index
    %222 = vector.load %arg15[%c0_79, %c0_80, %c0_81] : memref<2x8x32xf32, #tpu.memory_space<vmem>>, vector<2x8x32xf32>
    tpu.vector_store %arg15[%c0_79, %c0_80, %c0_81], %221 {strides = array<i32>} : memref<2x8x32xf32, #tpu.memory_space<vmem>>, vector<2x8x32xf32>,
    %c1_i32 = arith.constant 1 : i32
    %223 = arith.cmpi eq, %arg1, %c1_i32 : i32
    %224 = arith.extui %223 : i1 to i32
    %c0_i32_82 = arith.constant 0 : i32
    %225 = arith.cmpi ne, %224, %c0_i32_82 : i32
    scf.if %225 {
      %c0_83 = arith.constant 0 : index
      %c0_84 = arith.constant 0 : index
      %c0_85 = arith.constant 0 : index
      %226 = vector.load %arg14[%c0_83, %c0_84, %c0_85] : memref<2x8x32xf32, #tpu.memory_space<vmem>>, vector<2x8x32xf32>
      tpu.vector_store %arg14[%c0_83, %c0_84, %c0_85], %221 {strides = array<i32>} : memref<2x8x32xf32, #tpu.memory_space<vmem>>, vector<2x8x32xf32>,
    } else {
    }
    return
  }
  func.func @transform_0(%arg0: i32, %arg1: i32) -> (i32, i32, i32) {
    %c0_i32 = arith.constant 0 : i32
    %c0_i32_0 = arith.constant 0 : i32
    %c0_i32_1 = arith.constant 0 : i32
    return %arg0, %c0_i32, %c0_i32_0 : i32, i32, i32
  }
  func.func @transform_1(%arg0: i32, %arg1: i32) -> (i32, i32, i32) {
    %c0_i32 = arith.constant 0 : i32
    %c0_i32_0 = arith.constant 0 : i32
    %c0_i32_1 = arith.constant 0 : i32
    return %arg0, %c0_i32, %c0_i32_0 : i32, i32, i32
  }
  func.func @transform_2(%arg0: i32, %arg1: i32) -> (i32, i32, i32) {
    %c0_i32 = arith.constant 0 : i32
    %c0_i32_0 = arith.constant 0 : i32
    %c0_i32_1 = arith.constant 0 : i32
    return %arg1, %c0_i32, %c0_i32_0 : i32, i32, i32
  }
  func.func @transform_3(%arg0: i32, %arg1: i32) -> (i32, i32, i32) {
    %c0_i32 = arith.constant 0 : i32
    %c0_i32_0 = arith.constant 0 : i32
    %c0_i32_1 = arith.constant 0 : i32
    return %arg1, %c0_i32, %c0_i32_0 : i32, i32, i32
  }
  func.func @transform_4(%arg0: i32, %arg1: i32) -> (i32, i32, i32) {
    %c0_i32 = arith.constant 0 : i32
    %c0_i32_0 = arith.constant 0 : i32
    %c0_i32_1 = arith.constant 0 : i32
    return %arg1, %c0_i32, %c0_i32_0 : i32, i32, i32
  }
  func.func @transform_5(%arg0: i32, %arg1: i32) -> (i32, i32, i32) {
    %c0_i32 = arith.constant 0 : i32
    %c0_i32_0 = arith.constant 0 : i32
    %c0_i32_1 = arith.constant 0 : i32
    return %arg1, %c0_i32, %c0_i32_0 : i32, i32, i32
  }
  func.func @transform_6(%arg0: i32, %arg1: i32) -> (i32, i32, i32) {
    %c0_i32 = arith.constant 0 : i32
    %c0_i32_0 = arith.constant 0 : i32
    %c0_i32_1 = arith.constant 0 : i32
    return %arg1, %c0_i32, %c0_i32_0 : i32, i32, i32
  }
  func.func @transform_7(%arg0: i32, %arg1: i32) -> (i32, i32, i32) {
    %c0_i32 = arith.constant 0 : i32
    %c0_i32_0 = arith.constant 0 : i32
    %c0_i32_1 = arith.constant 0 : i32
    return %arg1, %c0_i32, %c0_i32_0 : i32, i32, i32
  }
  func.func @transform_8(%arg0: i32, %arg1: i32) -> (i32, i32, i32) {
    %c0_i32 = arith.constant 0 : i32
    %c0_i32_0 = arith.constant 0 : i32
    %c0_i32_1 = arith.constant 0 : i32
    return %arg1, %c0_i32, %c0_i32_0 : i32, i32, i32
  }
  func.func @transform_9(%arg0: i32, %arg1: i32) -> (i32, i32, i32) {
    %c0_i32 = arith.constant 0 : i32
    %c0_i32_0 = arith.constant 0 : i32
    %c0_i32_1 = arith.constant 0 : i32
    return %arg1, %c0_i32, %c0_i32_0 : i32, i32, i32
  }
  func.func @transform_10(%arg0: i32, %arg1: i32) -> (i32, i32, i32) {
    %c0_i32 = arith.constant 0 : i32
    %c0_i32_0 = arith.constant 0 : i32
    %c0_i32_1 = arith.constant 0 : i32
    return %arg1, %c0_i32, %c0_i32_0 : i32, i32, i32
  }
  func.func @transform_11(%arg0: i32, %arg1: i32) -> (i32, i32, i32) {
    %c0_i32 = arith.constant 0 : i32
    %c0_i32_0 = arith.constant 0 : i32
    %c0_i32_1 = arith.constant 0 : i32
    return %arg1, %c0_i32, %c0_i32_0 : i32, i32, i32
  }
  func.func @transform_12(%arg0: i32, %arg1: i32) -> (i32, i32, i32) {
    %c0_i32 = arith.constant 0 : i32
    %c0_i32_0 = arith.constant 0 : i32
    %c0_i32_1 = arith.constant 0 : i32
    return %arg0, %c0_i32, %c0_i32_0 : i32, i32, i32
  }
}

</mosaic_0001>

<bundles_post_ra>
// kernel: transformer_forward.1
= control target key start
LH: loop header
LB: loop body
LE: loop exit
PB: predicated region body
PF: predicated region fallthrough
CT: control target
= control target key end

     0   :  { %s2263_s0 = inlined_call_operand.vmem [shape: f32[2,8,32], index: 0, kind: input, shape index: {}]   ;;  %s2264_s1 = inlined_call_operand.vmem [shape: f32[2,1,8], index: 1, kind: input, shape index: {}]   ;;  %s2265_s2 = inlined_call_operand.vmem [shape: bf16[2,32,96], index: 2, kind: input, shape index: {}]   ;;  %s2266_s3 = inlined_call_operand.vmem [shape: bf16[2,32,32], index: 3, kind: input, shape index: {}]   ;;  %s2267_s4 = inlined_call_operand.vmem [shape: f32[2,1,32], index: 4, kind: input, shape index: {}]   ;;  %s2268_s5 = inlined_call_operand.vmem [shape: f32[2,1,32], index: 5, kind: input, shape index: {}]   ;;  %s2269_s6 = inlined_call_operand.vmem [shape: bf16[2,32,64], index: 6, kind: input, shape index: {}]   ;;  %s2270_s7 = inlined_call_operand.vmem [shape: f32[2,1,64], index: 7, kind: input, shape index: {}]   ;;  %s2271_s8 = inlined_call_operand.vmem [shape: bf16[2,64,32], index: 8, kind: input, shape index: {}]   ;;  %s2272_s9 = inlined_call_operand.vmem [shape: f32[2,1,32], index: 9, kind: input, shape index: {}]   ;;  %s2273_s10 = inlined_call_operand.vmem [shape: f32[2,1,32], index: 10, kind: input, shape index: {}]   ;;  %s2274_s11 = inlined_call_operand.vmem [shape: f32[2,1,32], index: 11, kind: input, shape index: {}]   ;;  %s2275_s12 = inlined_call_operand.hbm [shape: f32[2,8,32], index: 12, kind: output, shape index: {}]  }
   0x1   :  { %2277 = sst [smem:[#allocation8_spill]] %s2265_s2 }
   0x2   :  { %2278 = sst [smem:[#allocation9_spill]] %s2266_s3 }
   0x3   :  { %2279 = sst [smem:[#allocation10_spill]] %s2269_s6 }
   0x4   :  { %2280 = sst [smem:[#allocation11_spill]] %s2275_s12 }
   0x5   :  { %17 = vsyncpa [#allocation4], 0  ;;  %s1987_s21 = smov 0   ;;  %s1989_s22 = smov 0  }
   0x6   :  { %s1991_s23 = smov 0  }
   0x7 LB: > { %2281 = sst [smem:[#allocation6_spill]] %s1899_s22  ;;  %s32_s25 = sadd.s32 1, %s1899_s22  ;;  %s1903_s23 = sphi %s1991_s23, %s23_s23   ;;  %s1899_s22 = sphi %s1989_s22, %s2291_s22   ;;  %s1895_s21 = sphi %s1987_s21, %s2290_s21  }
   0x8   : > { %p33_p0 = scmp.ge.s32.totalorder %s32_s25, 2  ;;  %p1640_p1 = scmp.ge.s32.totalorder %s1903_s23, 1 }
   0x9   : > { %p474_p2 = scmp.lt.s32.totalorder %s1903_s23, 3 }
   0xa   : > { %s2293_s25 = smov (%p33_p0, %s32_s25), 0 }
   0xb   : > { %2282 = sst [smem:[#allocation7_spill]] %s2293_s25  ;;  %p475_p3 = pnand %p1640_p1, %p474_p2 }
   0xc   : > { %p564_p4 = scmp.lt.s32.totalorder (!%p475_p3), %s1895_s21, 1  ;;  %s2283_s2 = sld [smem:[#allocation8_spill]] (!%p475_p3) }
   0xd   : > { %478 = sbr.rel (%p475_p3) target bundleno = 1922 (0x782), region = 68  ;;  %s2284_s3 = sld [smem:[#allocation9_spill]] (!%p475_p3) }
   0xe   : > { %s2285_s6 = sld [smem:[#allocation10_spill]] (!%p475_p3)  ;;  %p1649_p5 = scmp.ne.s32.totalorder (!%p475_p3), %s1895_s21, 0 }
  0x12   : > { %s2010_s26 = scalar_select %p564_p4, %s1895_s21, 1 }
  0x14   : > { %s1715_s27 = sshll.u32 %s2010_s26, 4  ;;  %s587_s30 = scalar_lea.vmem %s2270_s7, %s2010_s26 }
  0x15   : > { %s568_s15 = scalar_lea.vmem %s2283_s2, %s1715_s27  ;;  %s2023_s18 = scalar_lea.vmem %s2284_s3, %s1715_s27 }
  0x16   : > { %s2032_s12 = scalar_lea.vmem %s2285_s6, %s1715_s27  ;;  %s1718_s13 = sshll.u32 %s2010_s26, 5 }
  0x17   : > { %s2042_s16 = scalar_lea.vmem %s2271_s8, %s1718_s13  ;;  %s595_s19 = scalar_lea.vmem %s2272_s9, %s2010_s26 }
  0x18   : > { %s598_s22 = scalar_lea.vmem %s2273_s10, %s2010_s26  ;;  %s601_s6 = scalar_lea.vmem %s2274_s11, %s2010_s26 }
  0x19   : > { %607 = sbr.rel (%p1649_p5) target bundleno = 33 (0x21), region = 72 }
  0x1e   : > { %v608_v0 = vld [vmem:[%s2263_s0] sm:$0xff]  ;;  %vm610_vm0 = vcmask 261120   ;;  %v609_v1 = vld [vmem:[%s2263_s0 + $0x8] sm:$0xff] }
  0x1f   : > { %611 = vst.msk [vmem:[#allocation2] sm:$0xff] %vm610_vm0, %v608_v0 }
  0x20   : > { %612 = vst.msk [vmem:[#allocation2 + $0x8] sm:$0xff] %vm610_vm0, %v609_v1 }
  0x21 PF: > { %v1720_v2 = vld [vmem:[%s568_s15 + $0x8] sm:$0xff]  ;;  %v1719_v3 = vld [vmem:[%s568_s15] sm:$0xff]  ;;  %vm632_vm1 = vcmask 261120   ;;  %s1905_s3 = smov 120   ;;  %s1906_s24 = smov 88   ;;  %vm665_vm2 = vcmask 64512  }
  0x22   : > { %642 = vmatpush.bf16.msra.mxu0 %v1720_v2  ;;  %s1907_s15 = smov 96   ;;  %s1908_s14 = smov 112   ;;  %vm736_vm3 = vcmask 1043456   ;;  %v1791_v41 = vld [vmem:[%s2264_s1] ss:$0 sm:$0xff]  ;;  %vm1138_vm4 = vcmask 130048  }
  0x23   : > { %s1909_s17 = smov 80   ;;  %s1910_s20 = smov 72   ;;  %v1792_v50 = vld [vmem:[%s2264_s1 + $0x1] ss:$0 sm:$0xff]  ;;  %vm1141_vm5 = vcmask 195584   ;;  %vm1370_vm15 = vcmask 523264  }
  0x24   : > { %s1911_s25 = smov 104   ;;  %s1912_s27 = smov 56  }
  0x25   : > { %s1913_s28 = smov 64   ;;  %s2287_s29 = scalar_lea.vmem %s2268_s5, %s2010_s26 }
  0x26   : > { %v2063_v4 = vld [vmem:[#allocation2] sm:$0xff]  ;;  %643 = vmatpush.bf16.msra.mxu0 %v1719_v3  ;;  %p1710_p6 = scmp.ne.s32.totalorder %s1895_s21, 1 }
  0x27   : > { %v2065_v5 = vld [vmem:[#allocation2 + $0x8] sm:$0xff] }
  0x28   : > { %v615_v6 = vpack.c.bf16 %v2065_v5, %v2063_v4 }
  0x2a   : > { %1658 = vmatmul.msk.bf16.vlgmr.msra.gmra.mxu0 %vm632_vm1, %v615_v6 }
  0xa7   : > { %v645_v7 = vpop.f32.mrf.mxu0 }
  0xa8   : > { %v652_v8 = vpack.c.bf16 %v645_v7, %v645_v7 }
  0xaa   : > { %v661_v9 = vunpack.c.l.b16 %v652_v8 }
  0xac   : > { %v2070_v10 = vpack.c.b16 %v661_v9, %v661_v9 }
  0xae   : > { %776 = vrot.lane.b32.xlu2 %v2070_v10, %s1905_s3  ;;  %778 = vrot.lane.b32.xlu1 %v2070_v10, %s1906_s24 }
  0xaf   : > { %663 = vrot.lane.b32.xlu0 %v2070_v10, %s1907_s15  ;;  %v647_v11 = vpop.f32.mrf.mxu0 }
  0xb0   : > { %v653_v12 = vpack.c.bf16 %v647_v11, %v647_v11 }
  0xb2   : > { %v686_v13 = vunpack.c.l.b16 %v653_v12 }
  0xb4   : > { %v2075_v14 = vpack.c.b16 %v686_v13, %v686_v13 }
  0xb6   : > { %799 = vrot.lane.b32.xlu2 %v2075_v14, %s1905_s3  ;;  %801 = vrot.lane.b32.xlu1 %v2075_v14, %s1906_s24  ;;  %s1914_s24 = smov 48  }
  0xb7   : > { %688 = vrot.lane.b32.xlu0 %v2075_v14, %s1907_s15  ;;  %s1915_s15 = smov 40  }
  0xbe   : > { %888 = vrot.lane.b32.xlu2 %v2070_v10, %s1908_s14  ;;  %913 = vrot.lane.b32.xlu1 %v2075_v14, %s1909_s17 }
  0xbf   : > { %890 = vrot.lane.b32.xlu0 %v2070_v10, %s1909_s17  ;;  %s1917_s17 = smov 16  }
  0xc6   : > { %1025 = vrot.lane.b32.xlu2 %v2075_v14, %s1910_s20  ;;  %1002 = vrot.lane.b32.xlu1 %v2070_v10, %s1910_s20  ;;  %s1918_s20 = smov 24  }
  0xc7   : > { %911 = vrot.lane.b32.xlu0 %v2075_v14, %s1908_s14  ;;  %s1916_s14 = smov 8  }
  0xce   : > { %1023 = vrot.lane.b32.xlu1 %v2075_v14, %s1911_s25 }
  0xcf   : > { %1000 = vrot.lane.b32.xlu0 %v2070_v10, %s1911_s25  ;;  %s2286_s25 = scalar_lea.vmem %s2267_s4, %s2010_s26 }
  0xd6   : > { %865 = vrot.lane.b32.xlu1 %v2075_v14, %s1912_s27 }
  0xd7   : > { %731 = vrot.lane.b32.xlu0 %v2070_v10, %s1913_s28 }
  0xdf   : > { %753 = vrot.lane.b32.xlu0 %v2075_v14, %s1913_s28 }
 0x108   : > { %v777_v15 = vpop.permute.xlu2 %776 }
 0x110   : > { %v800_v20 = vpop.permute.xlu2 %799 }
 0x118   : > { %v889_v25 = vpop.permute.xlu2 %888 }
 0x120   : > { %v779_v16 = vpop.permute.xlu1 %778  ;;  %v1026_v30 = vpop.permute.xlu2 %1025 }
 0x121   : > { %v664_v17 = vpop.permute.xlu0 %663  ;;  %v784_v18 = vsel %vm665_vm2, %v779_v16, 0  ;;  %v1031_v34 = vsel %vm665_vm2, %v1026_v30, 0 }
 0x122   : > { %v670_v19 = vsel %vm665_vm2, %v664_v17, 0  ;;  %793 = vmatpush.bf16.xpose.msrb.mxu0 %v784_v18 }
 0x123   : > { %679 = vmatpush.bf16.xpose.msra.mxu1 %v670_v19 }
 0x128   : > { %v802_v21 = vpop.permute.xlu1 %801 }
 0x129   : > { %v689_v22 = vpop.permute.xlu0 %688  ;;  %1663 = vmatmul.msk.bf16.vlgmr.msrb.gmra.mxu0 %vm665_vm2, %v777_v15  ;;  %v807_v23 = vsel %vm665_vm2, %v802_v21, 0 }
 0x12a   : > { %1659 = vmatmul.msk.bf16.vlgmr.msra.gmra.mxu1 %vm665_vm2, %v652_v8  ;;  %v694_v24 = vsel %vm665_vm2, %v689_v22, 0 }
 0x12b   : > { %703 = vmatpush.bf16.xpose.msra.mxu2 %v694_v24  ;;  %816 = vmatpush.bf16.xpose.msrb.mxu1 %v807_v23 }
 0x130   : > { %v914_v26 = vpop.permute.xlu1 %913 }
 0x131   : > { %v919_v27 = vsel %vm665_vm2, %v914_v26, 0  ;;  %v891_v28 = vpop.permute.xlu0 %890 }
 0x132   : > { %v896_v29 = vsel %vm665_vm2, %v891_v28, 0  ;;  %1660 = vmatmul.msk.bf16.vlgmr.msra.gmra.mxu2 %vm665_vm2, %v653_v12 }
 0x133   : > { %928 = vmatpush.bf16.xpose.msra.mxu1 %v919_v27  ;;  %905 = vmatpush.bf16.xpose.msra.mxu0 %v896_v29 }
 0x138   : > { %v1003_v31 = vpop.permute.xlu1 %1002 }
 0x139   : > { %v1008_v32 = vsel %vm665_vm2, %v1003_v31, 0  ;;  %v912_v33 = vpop.permute.xlu0 %911 }
 0x13a   : > { %1664 = vmatmul.msk.bf16.vlgmr.msrb.gmra.mxu1 %vm665_vm2, %v800_v20  ;;  %1667 = vmatmul.msk.bf16.vlgmr.msra.gmra.mxu0 %vm665_vm2, %v889_v25 }
 0x13b   : > { %1040 = vmatpush.bf16.xpose.msrb.mxu1 %v1031_v34  ;;  %1017 = vmatpush.bf16.xpose.msrb.mxu0 %v1008_v32 }
 0x140   : > { %v1024_v40 = vpop.permute.xlu1 %1023 }
 0x141   : > { %v1001_v35 = vpop.permute.xlu0 %1000 }
 0x148   : > { %v866_v21 = vpop.permute.xlu1 %865 }
 0x149   : > { %v732_v36 = vpop.permute.xlu0 %731  ;;  %v871_v27 = vsel %vm736_vm3, %v866_v21, 0 }
 0x14a   : > { %1668 = vmatmul.msk.bf16.vlgmr.msra.gmra.mxu1 %vm665_vm2, %v912_v33  ;;  %1671 = vmatmul.msk.bf16.vlgmr.msrb.gmra.mxu0 %vm665_vm2, %v1001_v35  ;;  %v738_v37 = vsel %vm736_vm3, %v732_v36, 0 }
 0x14b   : > { %747 = vmatpush.bf16.msra.mxu3 %v738_v37 }
 0x151   : > { %v754_v38 = vpop.permute.xlu0 %753 }
 0x152   : > { %v759_v39 = vsel %vm736_vm3, %v754_v38, 0 }
 0x153   : > { %768 = vmatpush.bf16.msrb.mxu3 %v759_v39 }
 0x15a   : > { %1672 = vmatmul.msk.bf16.vlgmr.msrb.gmra.mxu1 %vm665_vm2, %v1024_v40 }
 0x1a6   : > { %v795_v42 = vpop.f32.mrf.mxu0 }
 0x1a7   : > { %v681_v43 = vpop.f32.mrf.mxu1  ;;  %v796_v44 = vadd.f32 %v1791_v41, %v795_v42 }
 0x1a8   : > { %v682_v45 = vadd.f32 %v1791_v41, %v681_v43 }
 0x1a9   : > { %v822_v46 = vsel %vm665_vm2, %v796_v44, -inf }
 0x1aa   : > { %v709_v47 = vsel %vm665_vm2, %v682_v45, -inf  ;;  %823 = vmax.xlane.f32.xlu0 %v822_v46 }
 0x1ab   : > { %710 = vmax.xlane.f32.xlu2 %v709_v47 }
 0x1ae   : > { %v797_v48 = vpop.f32.mrf.mxu0 }
 0x1af   : > { %v683_v49 = vpop.f32.mrf.mxu1 }
 0x1b5   : > { %v705_v51 = vpop.f32.mrf.mxu2 }
 0x1b6   : > { %v706_v52 = vadd.f32 %v1792_v50, %v705_v51 }
 0x1b7   : > { %v818_v53 = vpop.f32.mrf.mxu1  ;;  %v907_v54 = vpop.f32.mrf.mxu0 }
 0x1b8   : > { %v908_v55 = vadd.f32 %v1791_v41, %v907_v54  ;;  %v712_v56 = vsel %vm665_vm2, %v706_v52, -inf  ;;  %v2124_v3 = vadd.f32 %v1792_v50, %v818_v53 }
 0x1b9   : > { %713 = vmax.xlane.f32.xlu1 %v712_v56 }
 0x1ba   : > { %v934_v57 = vsel %vm665_vm2, %v908_v55, -inf  ;;  %v825_v6 = vsel %vm665_vm2, %v2124_v3, -inf }
 0x1bb   : > { %935 = vmax.xlane.f32.xlu0 %v934_v57 }
 0x1bd   : > { %v707_v58 = vpop.f32.mrf.mxu2 }
 0x1bf   : > { %v820_v59 = vpop.f32.mrf.mxu1  ;;  %v909_v60 = vpop.f32.mrf.mxu0 }
 0x1c3   : > { %844 = vrot.lane.b32.xlu2 %v2070_v10, %s1912_s27 }
 0x1c7   : > { %v930_v61 = vpop.f32.mrf.mxu1  ;;  %v1019_v62 = vpop.f32.mrf.mxu0 }
 0x1c8   : > { %v2128_v7 = vadd.f32 %v1792_v50, %v930_v61  ;;  %v2134_v11 = vadd.f32 %v1791_v41, %v1019_v62 }
 0x1ca   : > { %v937_v8 = vsel %vm665_vm2, %v2128_v7, -inf  ;;  %v1046_v13 = vsel %vm665_vm2, %v2134_v11, -inf }
 0x1cf   : > { %956 = vrot.lane.b32.xlu0 %v2070_v10, %s1914_s24  ;;  %v932_v63 = vpop.f32.mrf.mxu1  ;;  %v1021_v0 = vpop.f32.mrf.mxu0 }
 0x1d2   : > { %977 = vrot.lane.b32.xlu1 %v2075_v14, %s1914_s24 }
 0x1d7   : > { %v1042_v1 = vpop.f32.mrf.mxu1 }
 0x1d8   : > { %v2132_v9 = vadd.f32 %v1792_v50, %v1042_v1 }
 0x1da   : > { %v1049_v12 = vsel %vm665_vm2, %v2132_v9, -inf }
 0x1df   : > { %v1044_v2 = vpop.f32.mrf.mxu1 }
 0x1ec   : > { %826 = vmax.xlane.f32.xlu2 %v825_v6 }
 0x1f4   : > { %938 = vmax.xlane.f32.xlu2 %v937_v8 }
 0x1f9   : > { %1050 = vmax.xlane.f32.xlu0 %v1049_v12 }
 0x1fc   : > { %1047 = vmax.xlane.f32.xlu1 %v1046_v13 }
 0x20c   : > { %1068 = vrot.lane.b32.xlu2 %v2070_v10, %s1915_s15 }
 0x215   : > { %1089 = vrot.lane.b32.xlu1 %v2075_v14, %s1915_s15 }
 0x21d   : > { %v824_v15 = vpop.xlane.xlu0 %823 }
 0x21e   : > { %v711_v16 = vpop.xlane.xlu2 %710  ;;  %v828_v17 = vsub.f32 %v796_v44, %v824_v15 }
 0x21f   : > { %v715_v18 = vsub.f32 %v682_v45, %v711_v16 }
 0x220   : > { %v830_v19 = vmul.f32 1.442695, %v828_v17 }
 0x221   : > { %v717_v20 = vmul.f32 1.442695, %v715_v18 }
 0x222   : > { %1799 = vpow2.f32 %v830_v19 }
 0x223   : > { %1801 = vpow2.f32 %v717_v20 }
 0x226   : > { %v845_v22 = vpop.permute.xlu2 %844 }
 0x227   : > { %v850_v23 = vsel %vm736_vm3, %v845_v22, 0 }
 0x228   : > { %v1800_v24 = vpop.eup %1799  ;;  %859 = vmatpush.bf16.msrb.mxu2 %v850_v23 }
 0x229   : > { %v1802_v25 = vpop.eup %1801  ;;  %v834_v26 = vsel %vm665_vm2, %v1800_v24, 0.0  ;;  %v842_v10 = vpack.c.bf16 %v1800_v24, %v1800_v24 }
 0x22a   : > { %835 = vadd.xlane.f32.xlu0 %v834_v26  ;;  %v729_v14 = vpack.c.bf16 %v1802_v25, %v1802_v25  ;;  %v721_v40 = vsel %vm665_vm2, %v1802_v25, 0.0 }
 0x22b   : > { %1665 = vmatmul.msk.bf16.vlgmr.msrb.gmra.mxu2 %vm665_vm2, %v842_v10 }
 0x22c   : > { %v714_v28 = vpop.xlane.xlu1 %713  ;;  %1661 = vmatmul.msk.bf16.vlgmr.msra.gmra.mxu3 %vm665_vm2, %v729_v14 }
 0x22d   : > { %v716_v29 = vsub.f32 %v706_v52, %v714_v28  ;;  %880 = vmatpush.bf16.msra.mxu3 %v871_v27 }
 0x22e   : > { %v936_v30 = vpop.xlane.xlu0 %935 }
 0x22f   : > { %v719_v31 = vmul.f32 1.442695, %v716_v29  ;;  %v940_v32 = vsub.f32 %v908_v55, %v936_v30 }
 0x231   : > { %1803 = vpow2.f32 %v719_v31  ;;  %v942_v33 = vmul.f32 1.442695, %v940_v32 }
 0x233   : > { %1805 = vpow2.f32 %v942_v33 }
 0x237   : > { %v1804_v34 = vpop.eup %1803 }
 0x238   : > { %v730_v37 = vpack.c.bf16 %v1804_v34, %v1804_v34 }
 0x239   : > { %v1806_v35 = vpop.eup %1805 }
 0x23a   : > { %v946_v36 = vsel %vm665_vm2, %v1806_v35, 0.0  ;;  %v954_v41 = vpack.c.bf16 %v1806_v35, %v1806_v35 }
 0x23b   : > { %947 = vadd.xlane.f32.xlu0 %v946_v36 }
 0x23c   : > { %1662 = vmatmul.msk.bf16.vlgmr.msrb.gmra.mxu3 %vm665_vm2, %v730_v37 }
 0x241   : > { %v957_v38 = vpop.permute.xlu0 %956 }
 0x242   : > { %v962_v39 = vsel %vm736_vm3, %v957_v38, 0 }
 0x243   : > { %722 = vadd.xlane.f32.xlu0 %v721_v40  ;;  %971 = vmatpush.bf16.msra.mxu2 %v962_v39 }
 0x244   : > { %v978_v42 = vpop.permute.xlu1 %977 }
 0x245   : > { %v983_v43 = vsel %vm736_vm3, %v978_v42, 0 }
 0x246   : > { %1669 = vmatmul.msk.bf16.vlgmr.msra.gmra.mxu2 %vm665_vm2, %v954_v41  ;;  %992 = vmatpush.bf16.msrb.mxu3 %v983_v43 }
 0x25f   : > { %v827_v44 = vpop.xlane.xlu2 %826 }
 0x260   : > { %v829_v45 = vsub.f32 %v2124_v3, %v827_v44 }
 0x262   : > { %v832_v46 = vmul.f32 1.442695, %v829_v45 }
 0x264   : > { %1807 = vpow2.f32 %v832_v46 }
 0x267   : > { %v939_v47 = vpop.xlane.xlu2 %938 }
 0x268   : > { %v941_v48 = vsub.f32 %v2128_v7, %v939_v47 }
 0x26a   : > { %v1808_v49 = vpop.eup %1807  ;;  %v944_v50 = vmul.f32 1.442695, %v941_v48 }
 0x26b   : > { %v843_v51 = vpack.c.bf16 %v1808_v49, %v1808_v49  ;;  %v837_v52 = vsel %vm665_vm2, %v1808_v49, 0.0 }
 0x26c   : > { %1809 = vpow2.f32 %v944_v50  ;;  %838 = vadd.xlane.f32.xlu2 %v837_v52  ;;  %v1051_v53 = vpop.xlane.xlu0 %1050  ;;  %v1721_v52 = vld [vmem:[%s2023_s18] sm:$0xff] }
 0x26d   : > { %1666 = vmatmul.msk.bf16.vlgmr.msra.gmra.mxu3 %vm665_vm2, %v843_v51  ;;  %v1053_v59 = vsub.f32 %v2132_v9, %v1051_v53  ;;  %v1722_v51 = vld [vmem:[%s2023_s18 + $0x8] sm:$0xff] }
 0x26e   : > { %1170 = vmatpush.bf16.msra.mxu0 %v1722_v51  ;;  %v1793_v51 = vld [vmem:[%s2286_s25] ss:$0 sm:$0xff] }
 0x26f   : > { %v1069_v54 = vpop.permute.xlu2 %1068  ;;  %v1048_v55 = vpop.xlane.xlu1 %1047  ;;  %v1056_v62 = vmul.f32 1.442695, %v1053_v59 }
 0x270   : > { %v1074_v56 = vsel %vm736_vm3, %v1069_v54, 0  ;;  %v1052_v57 = vsub.f32 %v2134_v11, %v1048_v55  ;;  %v724_v11 = vsel %vm665_vm2, %v1804_v34, 0.0 }
 0x271   : > { %1083 = vmatpush.bf16.msrb.mxu2 %v1074_v56 }
 0x272   : > { %v1810_v58 = vpop.eup %1809  ;;  %v1054_v60 = vmul.f32 1.442695, %v1052_v57  ;;  %1171 = vmatpush.bf16.msra.mxu0 %v1721_v52 }
 0x273   : > { %v949_v61 = vsel %vm665_vm2, %v1810_v58, 0.0  ;;  %v955_v0 = vpack.c.bf16 %v1810_v58, %v1810_v58 }
 0x274   : > { %1811 = vpow2.f32 %v1054_v60  ;;  %950 = vadd.xlane.f32.xlu1 %v949_v61 }
 0x275   : > { %1813 = vpow2.f32 %v1056_v62 }
 0x27a   : > { %v1812_v63 = vpop.eup %1811 }
 0x27b   : > { %v1066_v1 = vpack.c.bf16 %v1812_v63, %v1812_v63  ;;  %v1058_v2 = vsel %vm665_vm2, %v1812_v63, 0.0  ;;  %v1814_v3 = vpop.eup %1813 }
 0x27c   : > { %1059 = vadd.xlane.f32.xlu0 %v1058_v2  ;;  %v1061_v6 = vsel %vm665_vm2, %v1814_v3, 0.0  ;;  %v1067_v9 = vpack.c.bf16 %v1814_v3, %v1814_v3 }
 0x27d   : > { %1670 = vmatmul.msk.bf16.vlgmr.msrb.gmra.mxu3 %vm665_vm2, %v955_v0  ;;  %1673 = vmatmul.msk.bf16.vlgmr.msrb.gmra.mxu2 %vm665_vm2, %v1066_v1 }
 0x284   : > { %1062 = vadd.xlane.f32.xlu0 %v1061_v6 }
 0x287   : > { %v1090_v7 = vpop.permute.xlu1 %1089 }
 0x288   : > { %v1095_v8 = vsel %vm736_vm3, %v1090_v7, 0 }
 0x289   : > { %1104 = vmatpush.bf16.msra.mxu3 %v1095_v8 }
 0x28c   : > { %725 = vadd.xlane.f32.xlu0 %v724_v11 }
 0x28d   : > { %1674 = vmatmul.msk.bf16.vlgmr.msra.gmra.mxu3 %vm665_vm2, %v1067_v9 }
 0x29d   : > { %v836_v12 = vpop.xlane.xlu0 %835 }
 0x2ae   : > { %v948_v13 = vpop.xlane.xlu0 %947  ;;  %v861_v15 = vpop.f32.mrf.mxu2 }
 0x2af   : > { %v749_v16 = vpop.f32.mrf.mxu3 }
 0x2b6   : > { %v723_v17 = vpop.xlane.xlu0 %722  ;;  %v863_v18 = vpop.f32.mrf.mxu2 }
 0x2b7   : > { %1815 = vrcp.f32 %v723_v17  ;;  %v751_v19 = vpop.f32.mrf.mxu3  ;;  %v1919_v18 = vmov 32.0  }
 0x2b8   : > { %1817 = vrcp.f32 %v836_v12 }
 0x2bd   : > { %v1816_v20 = vpop.eup %1815 }
 0x2be   : > { %v774_v21 = vmul.f32 %v1816_v20, %v749_v16  ;;  %v1818_v10 = vpop.eup %1817 }
 0x2bf   : > { %v770_v22 = vpop.f32.mrf.mxu3  ;;  %v886_v28 = vmul.f32 %v1818_v10, %v861_v15 }
 0x2c7   : > { %v772_v23 = vpop.f32.mrf.mxu3 }
 0x2c9   : > { %v973_v24 = vpop.f32.mrf.mxu2 }
 0x2d1   : > { %v975_v25 = vpop.f32.mrf.mxu2 }
 0x2df   : > { %v839_v26 = vpop.xlane.xlu2 %838 }
 0x2e0   : > { %1819 = vrcp.f32 %v839_v26 }
 0x2e1   : > { %1821 = vrcp.f32 %v948_v13 }
 0x2e6   : > { %v1820_v14 = vpop.eup %1819 }
 0x2e7   : > { %v951_v31 = vpop.xlane.xlu1 %950  ;;  %v1822_v34 = vpop.eup %1821 }
 0x2e8   : > { %1823 = vrcp.f32 %v951_v31  ;;  %v998_v38 = vmul.f32 %v1822_v34, %v973_v24  ;;  %v1724_v31 = vld [vmem:[%s2032_s12 + $0x8] sm:$0xff] }
 0x2e9   : > { %1273 = vmatpush.bf16.msra.mxu1 %v1724_v31 }
 0x2ee   : > { %v1824_v35 = vpop.eup %1823 }
 0x2ef   : > { %v1060_v33 = vpop.xlane.xlu0 %1059 }
 0x2f0   : > { %v882_v27 = vpop.f32.mrf.mxu3  ;;  %1825 = vrcp.f32 %v1060_v33 }
 0x2f1   : > { %v887_v29 = vmul.f32 %v1820_v14, %v882_v27 }
 0x2f3   : > { %v1776_v30 = vpack.i.bf16 %v887_v29, %v886_v28 }
 0x2f5   : > { %1777 = vrot.lane.b32.xlu2 %v1776_v30, %s1916_s14 }
 0x2f6   : > { %v1826_v44 = vpop.eup %1825 }
 0x2f7   : > { %v1063_v41 = vpop.xlane.xlu0 %1062 }
 0x2f8   : > { %v884_v32 = vpop.f32.mrf.mxu3  ;;  %1827 = vrcp.f32 %v1063_v41 }
 0x2fe   : > { %v1828_v45 = vpop.eup %1827 }
 0x2ff   : > { %v726_v53 = vpop.xlane.xlu0 %725 }
 0x300   : > { %v994_v36 = vpop.f32.mrf.mxu3  ;;  %v1085_v37 = vpop.f32.mrf.mxu2  ;;  %1829 = vrcp.f32 %v726_v53 }
 0x301   : > { %v999_v39 = vmul.f32 %v1824_v35, %v994_v36  ;;  %v1110_v47 = vmul.f32 %v1826_v44, %v1085_v37  ;;  %1831 = vrcp.f32 %v1919_v18  ;;  %v1723_v35 = vld [vmem:[%s2032_s12] sm:$0xff] }
 0x302   : > { %1274 = vmatpush.bf16.msra.mxu1 %v1723_v35 }
 0x303   : > { %v1781_v40 = vpack.i.bf16 %v999_v39, %v998_v38 }
 0x305   : > { %1782 = vrot.lane.b32.xlu0 %v1781_v40, %s1917_s17 }
 0x306   : > { %v1830_v56 = vpop.eup %1829 }
 0x307   : > { %v775_v61 = vmul.f32 %v1830_v56, %v770_v22  ;;  %v1832_v19 = vpop.eup %1831 }
 0x308   : > { %v996_v42 = vpop.f32.mrf.mxu3  ;;  %v1087_v43 = vpop.f32.mrf.mxu2  ;;  %v1187_v20 = vmul.f32 32.0, %v1832_v19  ;;  %vm1191_vm6 = vweird.f32 %v1832_v19 }
 0x310   : > { %v1106_v46 = vpop.f32.mrf.mxu3 }
 0x311   : > { %v1111_v48 = vmul.f32 %v1828_v45, %v1106_v46 }
 0x313   : > { %v1786_v49 = vpack.i.bf16 %v1111_v48, %v1110_v47 }
 0x315   : > { %1787 = vrot.lane.b32.xlu1 %v1786_v49, %s1918_s20 }
 0x318   : > { %v1108_v50 = vpop.f32.mrf.mxu3 }
 0x34f   : > { %v1778_v54 = vpop.permute.xlu2 %1777 }
 0x350   : > { %v1780_v57 = vunpack.i.h.bf16 %v1778_v54  ;;  %v1779_v58 = vunpack.i.l.bf16 %v1778_v54 }
 0x352   : > { %v1136_v63 = vsel %vm665_vm2, %v774_v21, %v1779_v58  ;;  %v1137_v0 = vsel %vm665_vm2, %v775_v61, %v1780_v57  ;;  %v1188_v21 = vsub.f32 1.0, %v1187_v20 }
 0x354   : > { %v1189_v22 = vmul.f32 %v1832_v19, %v1188_v21 }
 0x356   : > { %v1190_v23 = vadd.f32 %v1832_v19, %v1189_v22 }
 0x358   : > { %v2178_v24 = vsel %vm1191_vm6, %v1832_v19, %v1190_v23  ;;  %v1726_v19 = vld [vmem:[%s2042_s16 + $0x8] sm:$0xff]  ;;  %v1725_v23 = vld [vmem:[%s2042_s16] sm:$0xff] }
 0x377   : > { %v1783_v55 = vpop.permute.xlu0 %1782 }
 0x378   : > { %v1785_v59 = vunpack.i.h.bf16 %v1783_v55  ;;  %v1784_v60 = vunpack.i.l.bf16 %v1783_v55  ;;  %v1794_v55 = vld [vmem:[%s2287_s29] ss:$0 sm:$0xff] }
 0x37a   : > { %v1140_v3 = vsel %vm1138_vm4, %v1137_v0, %v1785_v59  ;;  %v1139_v6 = vsel %vm1138_vm4, %v1136_v63, %v1784_v60 }
 0x387   : > { %v1788_v62 = vpop.permute.xlu1 %1787 }
 0x388   : > { %v1790_v1 = vunpack.i.h.bf16 %v1788_v62  ;;  %v1789_v2 = vunpack.i.l.bf16 %v1788_v62  ;;  %v1795_v62 = vld [vmem:[%s587_s30] ss:$0 sm:$0xff] }
 0x38a   : > { %v1142_v7 = vsel %vm1141_vm5, %v1139_v6, %v1789_v2  ;;  %v1143_v8 = vsel %vm1141_vm5, %v1140_v3, %v1790_v1 }
 0x38b   : > { %v1144_v9 = vpack.c.bf16 %v1143_v8, %v1142_v7 }
 0x38d   : > { %1683 = vmatmul.msk.bf16.vlgmr.msra.gmra.mxu0 %vm632_vm1, %v1144_v9  ;;  %v1728_v9 = vld [vmem:[%s2042_s16 + $0x18] sm:$0xff] }
 0x38e   : > { %1378 = vmatpush.bf16.msra.mxu2 %v1728_v9 }
 0x40a   : > { %v1173_v11 = vpop.f32.mrf.mxu0 }
 0x40b   : > { %v1178_v12 = vadd.f32 %v1173_v11, %v2063_v4 }
 0x40d   : > { %v1180_v13 = vsel %vm632_vm1, %v1178_v12, 0.0 }
 0x40e   : > { %1181 = vadd.xlane.f32.xlu2 %v1180_v13  ;;  %v1727_v13 = vld [vmem:[%s2042_s16 + $0x10] sm:$0xff] }
 0x40f   : > { %1379 = vmatpush.bf16.msra.mxu2 %v1727_v13 }
 0x412   : > { %v1175_v15 = vpop.f32.mrf.mxu0 }
 0x413   : > { %v1179_v16 = vadd.f32 %v1175_v15, %v2065_v5  ;;  %1380 = vmatpush.bf16.msra.mxu2 %v1726_v19 }
 0x415   : > { %v1183_v17 = vsel %vm632_vm1, %v1179_v16, 0.0 }
 0x416   : > { %1184 = vadd.xlane.f32.xlu0 %v1183_v17 }
 0x417   : > { %1381 = vmatpush.bf16.msra.mxu2 %v1725_v23 }
 0x481   : > { %v1182_v4 = vpop.xlane.xlu2 %1181 }
 0x482   : > { %v1193_v25 = vmul.f32 %v2178_v24, %v1182_v4 }
 0x484   : > { %v1195_v26 = vsub.f32 %v1178_v12, %v1193_v25 }
 0x486   : > { %v1197_v5 = vmul.f32 %v1195_v26, %v1195_v26 }
 0x488   : > { %v1199_v10 = vsel %vm632_vm1, %v1197_v5, 0.0 }
 0x489   : > { %1200 = vadd.xlane.f32.xlu1 %v1199_v10  ;;  %v1185_v14 = vpop.xlane.xlu0 %1184 }
 0x48a   : > { %v1194_v27 = vmul.f32 %v2178_v24, %v1185_v14 }
 0x48c   : > { %v1196_v28 = vsub.f32 %v1179_v16, %v1194_v27 }
 0x48e   : > { %v1198_v29 = vmul.f32 %v1196_v28, %v1196_v28 }
 0x490   : > { %v1202_v30 = vsel %vm632_vm1, %v1198_v29, 0.0 }
 0x491   : > { %1203 = vadd.xlane.f32.xlu2 %v1202_v30 }
 0x4fc   : > { %v1201_v32 = vpop.xlane.xlu1 %1200 }
 0x4fd   : > { %v1205_v33 = vmul.f32 %v1201_v32, %v2178_v24 }
 0x4ff   : > { %v1207_v34 = vadd.f32 1e-05, %v1205_v33 }
 0x501   : > { %1833 = vrsqrt.f32 %v1207_v34  ;;  %vm1215_vm8 = vweird.f32 %v1207_v34 }
 0x504   : > { %v1204_v36 = vpop.xlane.xlu2 %1203 }
 0x505   : > { %v1206_v37 = vmul.f32 %v1204_v36, %v2178_v24 }
 0x507   : > { %v1834_v38 = vpop.eup %1833  ;;  %v1208_v39 = vadd.f32 1e-05, %v1206_v37 }
 0x508   : > { %v1210_v40 = vmul.f32 %v1834_v38, %v1207_v34  ;;  %vm1216_vm7 = vweird.f32 %v1834_v38 }
 0x509   : > { %1835 = vrsqrt.f32 %v1208_v39  ;;  %vm1217_vm9 = vmor %vm1215_vm8, %vm1216_vm7  ;;  %vm1225_vm11 = vweird.f32 %v1208_v39 }
 0x50a   : > { %v1211_v41 = vmul.f32 %v1834_v38, %v1210_v40 }
 0x50c   : > { %v1212_v42 = vmul.f32 0.5, %v1211_v41 }
 0x50e   : > { %v1213_v43 = vsub.f32 1.5, %v1212_v42 }
 0x50f   : > { %v1836_v44 = vpop.eup %1835 }
 0x510   : > { %v1214_v45 = vmul.f32 %v1834_v38, %v1213_v43  ;;  %v1220_v46 = vmul.f32 %v1836_v44, %v1208_v39  ;;  %vm1226_vm10 = vweird.f32 %v1836_v44 }
 0x511   : > { %vm1227_vm12 = vmor %vm1225_vm11, %vm1226_vm10 }
 0x512   : > { %v1221_v47 = vmul.f32 %v1836_v44, %v1220_v46  ;;  %v1218_v48 = vsel %vm1217_vm9, %v1834_v38, %v1214_v45 }
 0x513   : > { %v1229_v52 = vmul.f32 %v1218_v48, %v1195_v26 }
 0x514   : > { %v1222_v49 = vmul.f32 0.5, %v1221_v47 }
 0x515   : > { %v1235_v56 = vmul.f32 %v1793_v51, %v1229_v52 }
 0x516   : > { %v1223_v50 = vsub.f32 1.5, %v1222_v49 }
 0x517   : > { %v2198_v59 = vadd.f32 %v1794_v55, %v1235_v56 }
 0x518   : > { %v1224_v53 = vmul.f32 %v1836_v44, %v1223_v50 }
 0x51a   : > { %v1228_v54 = vsel %vm1227_vm12, %v1836_v44, %v1224_v53 }
 0x51b   : > { %v1230_v57 = vmul.f32 %v1228_v54, %v1196_v28 }
 0x51d   : > { %v1236_v58 = vmul.f32 %v1793_v51, %v1230_v57 }
 0x51f   : > { %v2200_v60 = vadd.f32 %v1794_v55, %v1236_v58 }
 0x521   : > { %v1243_v61 = vpack.c.bf16 %v2200_v60, %v2198_v59 }
 0x523   : > { %1692 = vmatmul.msk.bf16.vlgmr.msra.gmra.mxu1 %vm632_vm1, %v1243_v61  ;;  %v1796_v61 = vld [vmem:[%s595_s19] ss:$0 sm:$0xff] }
 0x5a0   : > { %v1276_v63 = vpop.f32.mrf.mxu1 }
 0x5a1   : > { %v2210_v0 = vadd.f32 %v1795_v62, %v1276_v63 }
 0x5a3   : > { %v1283_v1 = vmul.f32 0.70710677, %v2210_v0  ;;  %v1281_v53 = vmul.f32 0.5, %v2210_v0 }
 0x5a5   : > { %v1285_v2 = vand.u32 2147483647, %v1283_v1  ;;  %vm1323_vm13 = vcmp.ge.f32.partialorder %v1283_v1, 0.0 }
 0x5a7   : > { %v1287_v3 = vmul.f32 0.3275911, %v1285_v2  ;;  %v1311_v17 = vmul.f32 %v1285_v2, %v1285_v2 }
 0x5a8   : > { %v1278_v6 = vpop.f32.mrf.mxu1 }
 0x5a9   : > { %v1289_v7 = vadd.f32 1.0, %v1287_v3  ;;  %v1279_v8 = vadd.f32 %v1795_v62, %v1278_v6  ;;  %v1313_v22 = vsub.f32 0.0, %v1311_v17 }
 0x5ab   : > { %1837 = vrcp.f32 %v1289_v7  ;;  %v1284_v11 = vmul.f32 0.70710677, %v1279_v8  ;;  %v1315_v5 = vmul.f32 1.442695, %v1313_v22  ;;  %v1282_v54 = vmul.f32 0.5, %v1279_v8 }
 0x5ad   : > { %v1286_v12 = vand.u32 2147483647, %v1284_v11  ;;  %vm1324_vm14 = vcmp.ge.f32.partialorder %v1284_v11, 0.0 }
 0x5af   : > { %v1288_v15 = vmul.f32 0.3275911, %v1286_v12  ;;  %v1312_v10 = vmul.f32 %v1286_v12, %v1286_v12 }
 0x5b1   : > { %v1838_v16 = vpop.eup %1837  ;;  %v1290_v18 = vadd.f32 1.0, %v1288_v15  ;;  %v1314_v30 = vsub.f32 0.0, %v1312_v10 }
 0x5b2   : > { %v1293_v20 = vmul.f32 1.0614054, %v1838_v16 }
 0x5b3   : > { %1839 = vrcp.f32 %v1290_v18  ;;  %v1317_v35 = vmul.f32 1.442695, %v1314_v30 }
 0x5b4   : > { %v1295_v21 = vadd.f32 -1.4531521, %v1293_v20  ;;  %1841 = vpow2.f32 %v1315_v5 }
 0x5b5   : > { %1843 = vpow2.f32 %v1317_v35 }
 0x5b6   : > { %v1297_v4 = vmul.f32 %v1838_v16, %v1295_v21 }
 0x5b8   : > { %v1299_v25 = vadd.f32 1.4214138, %v1297_v4 }
 0x5b9   : > { %v1840_v26 = vpop.eup %1839 }
 0x5ba   : > { %v1301_v14 = vmul.f32 %v1838_v16, %v1299_v25  ;;  %v1294_v27 = vmul.f32 1.0614054, %v1840_v26  ;;  %v1842_v38 = vpop.eup %1841 }
 0x5bb   : > { %v1844_v46 = vpop.eup %1843 }
 0x5bc   : > { %v1303_v28 = vadd.f32 -0.28449672, %v1301_v14  ;;  %v1296_v29 = vadd.f32 -1.4531521, %v1294_v27 }
 0x5be   : > { %v1305_v31 = vmul.f32 %v1838_v16, %v1303_v28  ;;  %v1298_v32 = vmul.f32 %v1840_v26, %v1296_v29  ;;  %v1797_v29 = vld [vmem:[%s598_s22] ss:$0 sm:$0xff] }
 0x5c0   : > { %v1307_v33 = vadd.f32 0.2548296, %v1305_v31  ;;  %v1300_v34 = vadd.f32 1.4214138, %v1298_v32  ;;  %v1798_v31 = vld [vmem:[%s601_s6] ss:$0 sm:$0xff] }
 0x5c2   : > { %v1309_v36 = vmul.f32 %v1838_v16, %v1307_v33  ;;  %v1302_v37 = vmul.f32 %v1840_v26, %v1300_v34 }
 0x5c4   : > { %v1319_v39 = vmul.f32 %v1842_v38, %v1309_v36  ;;  %v1304_v40 = vadd.f32 -0.28449672, %v1302_v37 }
 0x5c6   : > { %v1321_v41 = vsub.f32 1.0, %v1319_v39  ;;  %v1306_v42 = vmul.f32 %v1840_v26, %v1304_v40 }
 0x5c8   : > { %v1308_v43 = vadd.f32 0.2548296, %v1306_v42  ;;  %v1325_v44 = vsub.f32 0.0, %v1321_v41 }
 0x5ca   : > { %v1310_v45 = vmul.f32 %v1840_v26, %v1308_v43  ;;  %v1327_v48 = vsel %vm1323_vm13, %v1321_v41, %v1325_v44 }
 0x5cb   : > { %v1329_v51 = vadd.f32 1.0, %v1327_v48 }
 0x5cc   : > { %v1320_v47 = vmul.f32 %v1844_v46, %v1310_v45 }
 0x5cd   : > { %v1331_v56 = vmul.f32 %v1329_v51, %v1281_v53 }
 0x5ce   : > { %v1322_v49 = vsub.f32 1.0, %v1320_v47 }
 0x5d0   : > { %v1326_v50 = vsub.f32 0.0, %v1322_v49 }
 0x5d2   : > { %v1328_v52 = vsel %vm1324_vm14, %v1322_v49, %v1326_v50 }
 0x5d3   : > { %v1330_v55 = vadd.f32 1.0, %v1328_v52 }
 0x5d5   : > { %v1332_v57 = vmul.f32 %v1330_v55, %v1282_v54 }
 0x5d7   : > { %v1333_v58 = vpack.c.bf16 %v1332_v57, %v1331_v56 }
 0x5d9   : > { %1709 = vmatmul.msk.bf16.vlgmr.msra.gmra.mxu2 %vm1370_vm15, %v1333_v58 }
 0x65c   : > { %v1383_v62 = vpop.f32.mrf.mxu2 }
 0x65d   : > { %v1384_v63 = vadd.f32 %v1796_v61, %v1383_v62 }
 0x65f   : > { %v1388_v1 = vadd.f32 %v1384_v63, %v2198_v59 }
 0x661   : > { %v1390_v2 = vsel %vm632_vm1, %v1388_v1, 0.0 }
 0x662   : > { %1391 = vadd.xlane.f32.xlu0 %v1390_v2 }
 0x664   : > { %v1385_v0 = vpop.f32.mrf.mxu2 }
 0x665   : > { %v1386_v3 = vadd.f32 %v1796_v61, %v1385_v0 }
 0x667   : > { %v1389_v6 = vadd.f32 %v1386_v3, %v2200_v60 }
 0x669   : > { %v1393_v7 = vsel %vm632_vm1, %v1389_v6, 0.0 }
 0x66a   : > { %1394 = vadd.xlane.f32.xlu2 %v1393_v7 }
 0x6d5   : > { %v1392_v8 = vpop.xlane.xlu0 %1391 }
 0x6d6   : > { %v1396_v9 = vmul.f32 %v1392_v8, %v2178_v24 }
 0x6d8   : > { %v1398_v11 = vsub.f32 %v1388_v1, %v1396_v9 }
 0x6da   : > { %v1400_v12 = vmul.f32 %v1398_v11, %v1398_v11 }
 0x6dc   : > { %v1402_v13 = vsel %vm632_vm1, %v1400_v12, 0.0 }
 0x6dd   : > { %v1395_v15 = vpop.xlane.xlu2 %1394  ;;  %1403 = vadd.xlane.f32.xlu0 %v1402_v13 }
 0x6de   : > { %v1397_v59 = vmul.f32 %v1395_v15, %v2178_v24 }
 0x6e0   : > { %v1399_v16 = vsub.f32 %v1389_v6, %v1397_v59 }
 0x6e2   : > { %v1401_v17 = vmul.f32 %v1399_v16, %v1399_v16 }
 0x6e4   : > { %v1405_v18 = vsel %vm632_vm1, %v1401_v17, 0.0 }
 0x6e5   : > { %1406 = vadd.xlane.f32.xlu1 %v1405_v18 }
 0x750   : > { %v1404_v60 = vpop.xlane.xlu0 %1403 }
 0x751   : > { %v1408_v19 = vmul.f32 %v1404_v60, %v2178_v24 }
 0x753   : > { %v1410_v20 = vadd.f32 1e-05, %v1408_v19 }
 0x755   : > { %1845 = vrsqrt.f32 %v1410_v20  ;;  %vm1418_vm2 = vweird.f32 %v1410_v20 }
 0x758   : > { %v1407_v21 = vpop.xlane.xlu1 %1406 }
 0x759   : > { %v1409_v22 = vmul.f32 %v1407_v21, %v2178_v24 }
 0x75b   : > { %v1846_v23 = vpop.eup %1845  ;;  %v1411_v4 = vadd.f32 1e-05, %v1409_v22 }
 0x75c   : > { %v1413_v25 = vmul.f32 %v1846_v23, %v1410_v20  ;;  %vm1419_vm0 = vweird.f32 %v1846_v23 }
 0x75d   : > { %1847 = vrsqrt.f32 %v1411_v4  ;;  %vm1420_vm3 = vmor %vm1418_vm2, %vm1419_vm0  ;;  %vm1428_vm5 = vweird.f32 %v1411_v4 }
 0x75e   : > { %v1414_v26 = vmul.f32 %v1846_v23, %v1413_v25 }
 0x760   : > { %v1415_v5 = vmul.f32 0.5, %v1414_v26 }
 0x762   : > { %v1416_v10 = vsub.f32 1.5, %v1415_v5 }
 0x763   : > { %v1848_v14 = vpop.eup %1847 }
 0x764   : > { %v1417_v27 = vmul.f32 %v1846_v23, %v1416_v10  ;;  %v1423_v28 = vmul.f32 %v1848_v14, %v1411_v4  ;;  %vm1429_vm4 = vweird.f32 %v1848_v14 }
 0x765   : > { %vm1430_vm6 = vmor %vm1428_vm5, %vm1429_vm4 }
 0x766   : > { %v1421_v24 = vsel %vm1420_vm3, %v1846_v23, %v1417_v27  ;;  %v1424_v30 = vmul.f32 %v1848_v14, %v1423_v28 }
 0x767   : > { %v1432_v32 = vmul.f32 %v1421_v24, %v1398_v11 }
 0x768   : > { %v1425_v33 = vmul.f32 0.5, %v1424_v30 }
 0x769   : > { %v1438_v34 = vmul.f32 %v1797_v29, %v1432_v32 }
 0x76a   : > { %v1426_v35 = vsub.f32 1.5, %v1425_v33 }
 0x76b   : > { %v1444_v36 = vadd.f32 %v1798_v31, %v1438_v34 }
 0x76c   : > { %v1427_v37 = vmul.f32 %v1848_v14, %v1426_v35 }
 0x76d   : > { %1446 = vst.msk [vmem:[#allocation2] sm:$0xff] %vm632_vm1, %v1444_v36 }
 0x76e   : > { %v1431_v38 = vsel %vm1430_vm6, %v1848_v14, %v1427_v37 }
 0x76f   : > { %v1433_v39 = vmul.f32 %v1431_v38, %v1399_v16 }
 0x771   : > { %v1439_v40 = vmul.f32 %v1797_v29, %v1433_v39  ;;  %1451 = sbr.rel (%p1710_p6) target bundleno = 1912 (0x778), region = 76 }
 0x773   : > { %v1445_v41 = vadd.f32 %v1798_v31, %v1439_v40 }
 0x775   : > { %1447 = vst.msk [vmem:[#allocation2 + $0x8] sm:$0xff] %vm632_vm1, %v1445_v41 }
 0x776   : > { %1452 = vst.msk [vmem:[#allocation3] sm:$0xff] %vm632_vm1, %v1444_v36 }
 0x777   : > { %1453 = vst.msk [vmem:[#allocation3 + $0x8] sm:$0xff] %vm632_vm1, %v1445_v41 }
 0x778 PF: > { %s2288_s6 = sadd.s32 4294967295, %s1903_s23   ;;  %s2289_s17 = sld [smem:[#allocation11_spill]] }
 0x779   : > { %p1733_p7 = scmp.eq.s32.totalorder %s2288_s6, 1  ;;  %s1920_s12 = smov [#allocation3]  }
 0x77a   : > { %s1462_s18 = sshll.u32 %s1920_s12, 4  ;;  %s1921_s25 = smov 128   ;;  %s1463_s18 = int_to_ptr.vmem [resolvable:$true] %s1462_s18 }
 0x77e   : > { %s1464_s20 = sshll.u32 %s2289_s17, 4  ;;  %s1465_s20 = int_to_ptr.hbm [resolvable:$true] %s1464_s20 }
 0x77f   : > { %1730 = dma.vmem_to_hbm [thread:$0]  (%p1733_p7), %s1463_s18, 256, %s1465_s20, [#allocation4], %s1921_s25, %s1921_s25, %s1916_s14  }
 0x780   : > { %1890 = dma.done.wait (%p1733_p7), [#allocation4], 256  }
 0x781   : > { %1892 = vsyncadd (%p1733_p7), [#allocation4], 4294967040 }
 0x782 PF: > { %s23_s23 = sadd.s32 1, %s1903_s23   ;;  %s2290_s21 = sld [smem:[#allocation6_spill]] }
 0x783   : > { %p20_p8 = scmp.ge.s32.totalorder %s23_s23, 4   ;;  %s2291_s22 = sld [smem:[#allocation7_spill]] }
 0x785   :  { %22 = sbr.rel (!%p20_p8) target bundleno = 7 (0x7), region = 137 }
 0x78a   :  { %1481 = vsyncpa [#allocation4], 1 }
 0x78b   :  { %1483 = vsyncpa [#allocation4 + $0x1], 1 }

</bundles_post_ra>
